<compile_context>
chip_gen: v5e
topology: v5e:2x2
jax: 0.10.0
libtpu: 0.0.40
codegen_flags: <defaults>
</compile_context>

<pallas_src>
import functools

import jax
import jax.numpy as jnp
from jax.experimental import pallas as pl
from jax.experimental.pallas import tpu as pltpu


def _round_up(x, m):
    return ((x + m - 1) // m) * m


# ----------------------------------------------------------------------------
# Pallas kernel: the serial GRU recurrence over one (batch block, time chunk)
# ----------------------------------------------------------------------------
def _gru_recurrence_kernel(gi_ref, h0_ref, whh_ref, bhh_ref, y_ref, hn_ref,
                           h_state, *, hidden_pad, t_chunk, seq_len, mask_time):
    c = pl.program_id(1)  # time-chunk index (grid axis 1, "arbitrary")

    @pl.when(c == 0)
    def _():
        h_state[...] = h0_ref[...].astype(jnp.float32)

    Hp = hidden_pad
    whh = whh_ref[...]          # (Hp, 3*Hp)  resident across the chunk
    bhh = bhh_ref[...]          # (1, 3*Hp)

    # Short fixed trip-count: fully unrolled straight-line code; h stays in vregs.
    h = h_state[...]            # (B_blk, Hp) f32 carried state
    for i in range(t_chunk):
        gi = gi_ref[i]          # (B_blk, 3*Hp) f32; b_ih already folded in
        gh = jnp.dot(h, whh, preferred_element_type=jnp.float32) + bhh
        # Lane-aligned gate slabs (Hp is a multiple of 128) -> pure VPU math.
        r = jax.nn.sigmoid(gi[:, 0:Hp] + gh[:, 0:Hp])
        z = jax.nn.sigmoid(gi[:, Hp:2 * Hp] + gh[:, Hp:2 * Hp])
        n = jnp.tanh(gi[:, 2 * Hp:3 * Hp] + r * gh[:, 2 * Hp:3 * Hp])
        h_new = n + z * (h - n)          # == (1 - z) * n + z * h
        if mask_time:
            # Freeze the state on padded (beyond-seq_len) timesteps.
            valid = (c * t_chunk + i) < seq_len
            h_new = jnp.where(valid, h_new, h)
        y_ref[i] = h_new.astype(y_ref.dtype)
        h = h_new

    h_state[...] = h

    @pl.when(c == pl.num_programs(1) - 1)
    def _():
        hn_ref[...] = h.astype(hn_ref.dtype)


def _gru_layer_recurrence(gi, h0, w_hh_t, b_hh, *, hidden_pad, t_chunk, seq_len,
                          batch_block, out_dtype):
    """Runs the recurrence given precomputed gi: (Sp, Bp, 3*Hp) -> (y, h_n)."""
    sp, bp, g3 = gi.shape
    hp = hidden_pad
    n_chunks = sp // t_chunk
    n_bblk = bp // batch_block

    kernel = functools.partial(
        _gru_recurrence_kernel, hidden_pad=hp, t_chunk=t_chunk, seq_len=seq_len,
        mask_time=(n_chunks * t_chunk != seq_len))

    y, hn = pl.pallas_call(
        kernel,
        out_shape=(jax.ShapeDtypeStruct((sp, bp, hp), out_dtype),
                   jax.ShapeDtypeStruct((bp, hp), out_dtype)),
        grid_spec=pltpu.PrefetchScalarGridSpec(
            num_scalar_prefetch=0,
            grid=(n_bblk, n_chunks),
            in_specs=[
                # precomputed input projection, chunked over time / batch blocks
                pl.BlockSpec((t_chunk, batch_block, g3), lambda b, c: (c, b, 0)),
                pl.BlockSpec((batch_block, hp), lambda b, c: (b, 0)),   # h0
                pl.BlockSpec((hp, g3), lambda b, c: (0, 0)),            # W_hh^T
                pl.BlockSpec((1, g3), lambda b, c: (0, 0)),             # b_hh
            ],
            out_specs=(
                pl.BlockSpec((t_chunk, batch_block, hp), lambda b, c: (c, b, 0)),
                pl.BlockSpec((batch_block, hp), lambda b, c: (b, 0)),
            ),
            scratch_shapes=[pltpu.VMEM((batch_block, hp), jnp.float32)],
        ),
        compiler_params=pltpu.CompilerParams(
            dimension_semantics=("parallel", "arbitrary")),
    )(gi, h0, w_hh_t, b_hh)
    return y, hn


# ----------------------------------------------------------------------------
# Parameter handling (PyTorch nn.GRU shapes) + padded-layout preparation
# ----------------------------------------------------------------------------
def init_gru_params(key, num_inputs, num_hiddens, num_layers, dtype=jnp.float32):
    params = []
    k = 1.0 / float(num_hiddens) ** 0.5
    for layer in range(num_layers):
        d_in = num_inputs if layer == 0 else num_hiddens
        key, k1, k2, k3, k4 = jax.random.split(key, 5)
        params.append({
            "w_ih": jax.random.uniform(k1, (3 * num_hiddens, d_in), dtype, -k, k),
            "w_hh": jax.random.uniform(k2, (3 * num_hiddens, num_hiddens), dtype, -k, k),
            "b_ih": jax.random.uniform(k3, (3 * num_hiddens,), dtype, -k, k),
            "b_hh": jax.random.uniform(k4, (3 * num_hiddens,), dtype, -k, k),
        })
    return params


def _pad_gate_cols(w_t, h, hp):
    """(D, 3*h) with gate order [r|z|n] -> (D, 3*hp), each gate zero-padded."""
    d = w_t.shape[0]
    w3 = w_t.reshape(d, 3, h)
    w3 = jnp.pad(w3, ((0, 0), (0, 0), (0, hp - h)))
    return w3.reshape(d, 3 * hp)


def _prepare_layer(p, hidden, hp, pad_rows_to):
    w_ih_t = _pad_gate_cols(p["w_ih"].T, hidden, hp)           # (D_in, 3*hp)
    if pad_rows_to is not None and pad_rows_to > w_ih_t.shape[0]:
        w_ih_t = jnp.pad(w_ih_t, ((0, pad_rows_to - w_ih_t.shape[0]), (0, 0)))
    w_hh_t = _pad_gate_cols(p["w_hh"].T, hidden, hp)           # (hidden, 3*hp)
    w_hh_t = jnp.pad(w_hh_t, ((0, hp - hidden), (0, 0)))       # (hp, 3*hp)
    b_ih = _pad_gate_cols(p["b_ih"].reshape(1, -1), hidden, hp)  # (1, 3*hp)
    b_hh = _pad_gate_cols(p["b_hh"].reshape(1, -1), hidden, hp)  # (1, 3*hp)
    return w_ih_t, w_hh_t, b_ih, b_hh


# ----------------------------------------------------------------------------
# Forward: matches nn.GRU(inputs, H) -> (output, h_n)
# ----------------------------------------------------------------------------
def gru_forward(params, inputs, H=None, *, t_chunk=8):
    S, B, _ = inputs.shape
    L = len(params)
    hidden = params[0]["w_hh"].shape[1]
    dtype = inputs.dtype

    hp = _round_up(max(hidden, 128), 128)       # lane-aligned hidden
    bp = _round_up(B, 8)                        # sublane-aligned batch
    if bp > 128:
        bp = _round_up(B, 128)
    b_blk = min(bp, 128)
    tc = max(1, min(t_chunk, S))
    sp = _round_up(S, tc)

    # Pad activations / initial state once; stay in padded layout between layers.
    x = jnp.pad(inputs, ((0, sp - S), (0, bp - B), (0, 0)))
    if H is None:
        h0 = jnp.zeros((L, bp, hp), dtype)
    else:
        h0 = jnp.pad(H.astype(dtype), ((0, 0), (0, bp - B), (0, hp - hidden)))

    h_ns = []
    for layer, p in enumerate(params):
        w_ih_t, w_hh_t, b_ih, b_hh = _prepare_layer(
            p, hidden, hp, pad_rows_to=(None if layer == 0 else hp))
        # Whole-sequence input projection as one large (S*B, D) x (D, 3*Hp)
        # matmul (XLA / MXU), with b_ih folded in -> off the serial critical path.
        gi = (jnp.einsum("sbd,dg->sbg", x.astype(jnp.float32),
                         w_ih_t.astype(jnp.float32),
                         preferred_element_type=jnp.float32)
              + b_ih.astype(jnp.float32))
        y, hn = _gru_layer_recurrence(
            gi, h0[layer], w_hh_t, b_hh,
            hidden_pad=hp, t_chunk=tc, seq_len=S, batch_block=b_blk,
            out_dtype=dtype)
        x = y
        h_ns.append(hn)
        # TODO(synk): inter-layer dropout not implemented (module default dropout=0)

    out = x[:S, :B, :hidden]
    h_n = jnp.stack(h_ns, axis=0)[:, :B, :hidden]
    return out, h_n


# ----------------------------------------------------------------------------
# Pure-JAX reference (for correctness check)
# ----------------------------------------------------------------------------
def gru_forward_ref(params, inputs, H=None):
    S, B, _ = inputs.shape
    L = len(params)
    Hd = params[0]["w_hh"].shape[1]
    if H is None:
        H = jnp.zeros((L, B, Hd), inputs.dtype)
    x = inputs
    h_ns = []
    for layer in range(L):
        p = params[layer]
        h = H[layer]
        w_ih_t = p["w_ih"].T
        w_hh_t = p["w_hh"].T
        ys = []
        for t in range(S):
            gi = x[t] @ w_ih_t + p["b_ih"]
            gh = h @ w_hh_t + p["b_hh"]
            r = jax.nn.sigmoid(gi[:, :Hd] + gh[:, :Hd])
            z = jax.nn.sigmoid(gi[:, Hd:2 * Hd] + gh[:, Hd:2 * Hd])
            n = jnp.tanh(gi[:, 2 * Hd:] + r * gh[:, 2 * Hd:])
            h = (1.0 - z) * n + z * h
            ys.append(h)
        x = jnp.stack(ys, axis=0)
        h_ns.append(h)
    return x, jnp.stack(h_ns, axis=0)


if __name__ == "__main__":
    num_inputs, num_hiddens, num_layers = 16, 32, 2
    seq_len, batch = 8, 2

    key = jax.random.PRNGKey(0)
    key, pkey, xkey, hkey = jax.random.split(key, 4)

    params = init_gru_params(pkey, num_inputs, num_hiddens, num_layers)
    x = jax.random.normal(xkey, (seq_len, batch, num_inputs), jnp.float32)
    h0 = jax.random.normal(hkey, (num_layers, batch, num_hiddens), jnp.float32)

    out, h_n = gru_forward(params, x, h0)
    out = jax.block_until_ready(out)
    h_n = jax.block_until_ready(h_n)

    out_ref, h_n_ref = gru_forward_ref(params, x, h0)
    assert out.shape == (seq_len, batch, num_hiddens)
    assert h_n.shape == (num_layers, batch, num_hiddens)
    assert jnp.allclose(out, out_ref, atol=1e-4, rtol=1e-4), \
        float(jnp.max(jnp.abs(out - out_ref)))
    assert jnp.allclose(h_n, h_n_ref, atol=1e-4, rtol=1e-4)

    # Also exercise H=None (zero initial state) and a seq_len that does not
    # divide the time chunk (exercises the in-kernel time-padding mask).
    out2, h_n2 = gru_forward(params, x[:5], None, t_chunk=4)
    out2 = jax.block_until_ready(out2)
    out2_ref, h_n2_ref = gru_forward_ref(params, x[:5], None)
    assert jnp.allclose(out2, out2_ref, atol=1e-4, rtol=1e-4)
    assert jnp.allclose(h_n2, h_n2_ref, atol=1e-4, rtol=1e-4)

    print("KERNEL_OK")
</pallas_src>

<mosaic_0001>
module attributes {stable_mosaic.version = 11 : i64} {
  func.func @_gru_recurrence_kernel(%arg0: i32, %arg1: i32, %arg2: memref<8x8x384xf32, #tpu.memory_space<vmem>>, %arg3: memref<8x128xf32, #tpu.memory_space<vmem>>, %arg4: memref<128x384xf32, #tpu.memory_space<vmem>>, %arg5: memref<1x384xf32, #tpu.memory_space<vmem>>, %arg6: memref<8x8x128xf32, #tpu.memory_space<vmem>>, %arg7: memref<8x128xf32, #tpu.memory_space<vmem>>, %arg8: memref<8x128xf32, #tpu.memory_space<vmem>>) attributes {dimension_semantics = [#tpu.dimension_semantics<parallel>, #tpu.dimension_semantics<arbitrary>], iteration_bounds = array<i64: 1, 1>, scalar_prefetch = 0 : i64, scratch_operands = 1 : i64, tpu.core_type = #tpu.core_type<tc>, window_params = [{transform_indices = @transform_0, window_bounds = array<i64: 8, 8, 384>}, {transform_indices = @transform_1, window_bounds = array<i64: 8, 128>}, {pipeline_mode = #tpu.pipeline_mode<synchronous>, transform_indices = @transform_2, window_bounds = array<i64: 128, 384>}, {pipeline_mode = #tpu.pipeline_mode<synchronous>, transform_indices = @transform_3, window_bounds = array<i64: 1, 384>}, {transform_indices = @transform_4, window_bounds = array<i64: 8, 8, 128>}, {transform_indices = @transform_5, window_bounds = array<i64: 8, 128>}]} {
    %c0_i32 = arith.constant 0 : i32
    %0 = arith.cmpi eq, %arg1, %c0_i32 : i32
    %1 = arith.extui %0 : i1 to i32
    %c0_i32_0 = arith.constant 0 : i32
    %2 = arith.cmpi ne, %1, %c0_i32_0 : i32
    scf.if %2 {
      %c0_74 = arith.constant 0 : index
      %c0_75 = arith.constant 0 : index
      %266 = vector.load %arg3[%c0_74, %c0_75] : memref<8x128xf32, #tpu.memory_space<vmem>>, vector<8x128xf32>
      %c0_76 = arith.constant 0 : index
      %c0_77 = arith.constant 0 : index
      %267 = vector.load %arg8[%c0_76, %c0_77] : memref<8x128xf32, #tpu.memory_space<vmem>>, vector<8x128xf32>
      tpu.vector_store %arg8[%c0_76, %c0_77], %266 {strides = array<i32>} : memref<8x128xf32, #tpu.memory_space<vmem>>, vector<8x128xf32>,
    } else {
    }
    %c0 = arith.constant 0 : index
    %c0_1 = arith.constant 0 : index
    %3 = vector.load %arg4[%c0, %c0_1] : memref<128x384xf32, #tpu.memory_space<vmem>>, vector<128x384xf32>
    %c0_2 = arith.constant 0 : index
    %c0_3 = arith.constant 0 : index
    %4 = vector.load %arg5[%c0_2, %c0_3] : memref<1x384xf32, #tpu.memory_space<vmem>>, vector<1x384xf32>
    %c0_4 = arith.constant 0 : index
    %c0_5 = arith.constant 0 : index
    %5 = vector.load %arg8[%c0_4, %c0_5] : memref<8x128xf32, #tpu.memory_space<vmem>>, vector<8x128xf32>
    %c0_6 = arith.constant 0 : index
    %c0_7 = arith.constant 0 : index
    %c0_8 = arith.constant 0 : index
    %6 = vector.load %arg2[%c0_6, %c0_7, %c0_8] : memref<8x8x384xf32, #tpu.memory_space<vmem>>, vector<1x8x384xf32>
    %7 = vector.shape_cast %6 : vector<1x8x384xf32> to vector<8x384xf32>
    %cst = arith.constant dense<0.000000e+00> : vector<8x384xf32>
    %8 = tpu.matmul %5, %3, %cst {dimension_numbers = #tpu.dot_dimension_numbers<[1], [0], [0], [1], [0, 0, 1, 1], [], []>} : vector<8x128xf32>, vector<128x384xf32>, vector<8x384xf32> -> vector<8x384xf32>
    %9 = vector.broadcast %4 : vector<1x384xf32> to vector<8x384xf32>
    %10 = arith.addf %8, %9 : vector<8x384xf32>
    %11 = vector.extract_strided_slice %7 {offsets = [0, 0], sizes = [8, 128], strides = [1, 1]} : vector<8x384xf32> to vector<8x128xf32>
    %12 = vector.extract_strided_slice %10 {offsets = [0, 0], sizes = [8, 128], strides = [1, 1]} : vector<8x384xf32> to vector<8x128xf32>
    %13 = arith.addf %11, %12 : vector<8x128xf32>
    %14 = arith.negf %13 : vector<8x128xf32>
    %15 = math.exp %14 : vector<8x128xf32>
    %cst_9 = arith.constant 1.000000e+00 : f32
    %16 = vector.broadcast %cst_9 : f32 to vector<8x128xf32>
    %17 = arith.addf %16, %15 : vector<8x128xf32>
    %18 = arith.divf %16, %17 : vector<8x128xf32>
    %19 = vector.extract_strided_slice %7 {offsets = [0, 128], sizes = [8, 128], strides = [1, 1]} : vector<8x384xf32> to vector<8x128xf32>
    %20 = vector.extract_strided_slice %10 {offsets = [0, 128], sizes = [8, 128], strides = [1, 1]} : vector<8x384xf32> to vector<8x128xf32>
    %21 = arith.addf %19, %20 : vector<8x128xf32>
    %22 = arith.negf %21 : vector<8x128xf32>
    %23 = math.exp %22 : vector<8x128xf32>
    %cst_10 = arith.constant 1.000000e+00 : f32
    %24 = vector.broadcast %cst_10 : f32 to vector<8x128xf32>
    %25 = arith.addf %24, %23 : vector<8x128xf32>
    %26 = arith.divf %24, %25 : vector<8x128xf32>
    %27 = vector.extract_strided_slice %7 {offsets = [0, 256], sizes = [8, 128], strides = [1, 1]} : vector<8x384xf32> to vector<8x128xf32>
    %28 = vector.extract_strided_slice %10 {offsets = [0, 256], sizes = [8, 128], strides = [1, 1]} : vector<8x384xf32> to vector<8x128xf32>
    %29 = arith.mulf %18, %28 : vector<8x128xf32>
    %30 = arith.addf %27, %29 : vector<8x128xf32>
    %31 = math.tanh %30 : vector<8x128xf32>
    %32 = arith.subf %5, %31 : vector<8x128xf32>
    %33 = arith.mulf %26, %32 : vector<8x128xf32>
    %34 = arith.addf %31, %33 : vector<8x128xf32>
    %c0_11 = arith.constant 0 : index
    %c0_12 = arith.constant 0 : index
    %c0_13 = arith.constant 0 : index
    %35 = vector.load %arg6[%c0_11, %c0_12, %c0_13] : memref<8x8x128xf32, #tpu.memory_space<vmem>>, vector<1x8x128xf32>
    %36 = vector.shape_cast %35 : vector<1x8x128xf32> to vector<8x128xf32>
    %37 = vector.shape_cast %34 : vector<8x128xf32> to vector<1x8x128xf32>
    tpu.vector_store %arg6[%c0_11, %c0_12, %c0_13], %37 {strides = array<i32>} : memref<8x8x128xf32, #tpu.memory_space<vmem>>, vector<1x8x128xf32>,
    %c1 = arith.constant 1 : index
    %c0_14 = arith.constant 0 : index
    %c0_15 = arith.constant 0 : index
    %38 = vector.load %arg2[%c1, %c0_14, %c0_15] : memref<8x8x384xf32, #tpu.memory_space<vmem>>, vector<1x8x384xf32>
    %39 = vector.shape_cast %38 : vector<1x8x384xf32> to vector<8x384xf32>
    %cst_16 = arith.constant dense<0.000000e+00> : vector<8x384xf32>
    %40 = tpu.matmul %34, %3, %cst_16 {dimension_numbers = #tpu.dot_dimension_numbers<[1], [0], [0], [1], [0, 0, 1, 1], [], []>} : vector<8x128xf32>, vector<128x384xf32>, vector<8x384xf32> -> vector<8x384xf32>
    %41 = vector.broadcast %4 : vector<1x384xf32> to vector<8x384xf32>
    %42 = arith.addf %40, %41 : vector<8x384xf32>
    %43 = vector.extract_strided_slice %39 {offsets = [0, 0], sizes = [8, 128], strides = [1, 1]} : vector<8x384xf32> to vector<8x128xf32>
    %44 = vector.extract_strided_slice %42 {offsets = [0, 0], sizes = [8, 128], strides = [1, 1]} : vector<8x384xf32> to vector<8x128xf32>
    %45 = arith.addf %43, %44 : vector<8x128xf32>
    %46 = arith.negf %45 : vector<8x128xf32>
    %47 = math.exp %46 : vector<8x128xf32>
    %cst_17 = arith.constant 1.000000e+00 : f32
    %48 = vector.broadcast %cst_17 : f32 to vector<8x128xf32>
    %49 = arith.addf %48, %47 : vector<8x128xf32>
    %50 = arith.divf %48, %49 : vector<8x128xf32>
    %51 = vector.extract_strided_slice %39 {offsets = [0, 128], sizes = [8, 128], strides = [1, 1]} : vector<8x384xf32> to vector<8x128xf32>
    %52 = vector.extract_strided_slice %42 {offsets = [0, 128], sizes = [8, 128], strides = [1, 1]} : vector<8x384xf32> to vector<8x128xf32>
    %53 = arith.addf %51, %52 : vector<8x128xf32>
    %54 = arith.negf %53 : vector<8x128xf32>
    %55 = math.exp %54 : vector<8x128xf32>
    %cst_18 = arith.constant 1.000000e+00 : f32
    %56 = vector.broadcast %cst_18 : f32 to vector<8x128xf32>
    %57 = arith.addf %56, %55 : vector<8x128xf32>
    %58 = arith.divf %56, %57 : vector<8x128xf32>
    %59 = vector.extract_strided_slice %39 {offsets = [0, 256], sizes = [8, 128], strides = [1, 1]} : vector<8x384xf32> to vector<8x128xf32>
    %60 = vector.extract_strided_slice %42 {offsets = [0, 256], sizes = [8, 128], strides = [1, 1]} : vector<8x384xf32> to vector<8x128xf32>
    %61 = arith.mulf %50, %60 : vector<8x128xf32>
    %62 = arith.addf %59, %61 : vector<8x128xf32>
    %63 = math.tanh %62 : vector<8x128xf32>
    %64 = arith.subf %34, %63 : vector<8x128xf32>
    %65 = arith.mulf %58, %64 : vector<8x128xf32>
    %66 = arith.addf %63, %65 : vector<8x128xf32>
    %c1_19 = arith.constant 1 : index
    %c0_20 = arith.constant 0 : index
    %c0_21 = arith.constant 0 : index
    %67 = vector.load %arg6[%c1_19, %c0_20, %c0_21] : memref<8x8x128xf32, #tpu.memory_space<vmem>>, vector<1x8x128xf32>
    %68 = vector.shape_cast %67 : vector<1x8x128xf32> to vector<8x128xf32>
    %69 = vector.shape_cast %66 : vector<8x128xf32> to vector<1x8x128xf32>
    tpu.vector_store %arg6[%c1_19, %c0_20, %c0_21], %69 {strides = array<i32>} : memref<8x8x128xf32, #tpu.memory_space<vmem>>, vector<1x8x128xf32>,
    %c2 = arith.constant 2 : index
    %c0_22 = arith.constant 0 : index
    %c0_23 = arith.constant 0 : index
    %70 = vector.load %arg2[%c2, %c0_22, %c0_23] : memref<8x8x384xf32, #tpu.memory_space<vmem>>, vector<1x8x384xf32>
    %71 = vector.shape_cast %70 : vector<1x8x384xf32> to vector<8x384xf32>
    %cst_24 = arith.constant dense<0.000000e+00> : vector<8x384xf32>
    %72 = tpu.matmul %66, %3, %cst_24 {dimension_numbers = #tpu.dot_dimension_numbers<[1], [0], [0], [1], [0, 0, 1, 1], [], []>} : vector<8x128xf32>, vector<128x384xf32>, vector<8x384xf32> -> vector<8x384xf32>
    %73 = vector.broadcast %4 : vector<1x384xf32> to vector<8x384xf32>
    %74 = arith.addf %72, %73 : vector<8x384xf32>
    %75 = vector.extract_strided_slice %71 {offsets = [0, 0], sizes = [8, 128], strides = [1, 1]} : vector<8x384xf32> to vector<8x128xf32>
    %76 = vector.extract_strided_slice %74 {offsets = [0, 0], sizes = [8, 128], strides = [1, 1]} : vector<8x384xf32> to vector<8x128xf32>
    %77 = arith.addf %75, %76 : vector<8x128xf32>
    %78 = arith.negf %77 : vector<8x128xf32>
    %79 = math.exp %78 : vector<8x128xf32>
    %cst_25 = arith.constant 1.000000e+00 : f32
    %80 = vector.broadcast %cst_25 : f32 to vector<8x128xf32>
    %81 = arith.addf %80, %79 : vector<8x128xf32>
    %82 = arith.divf %80, %81 : vector<8x128xf32>
    %83 = vector.extract_strided_slice %71 {offsets = [0, 128], sizes = [8, 128], strides = [1, 1]} : vector<8x384xf32> to vector<8x128xf32>
    %84 = vector.extract_strided_slice %74 {offsets = [0, 128], sizes = [8, 128], strides = [1, 1]} : vector<8x384xf32> to vector<8x128xf32>
    %85 = arith.addf %83, %84 : vector<8x128xf32>
    %86 = arith.negf %85 : vector<8x128xf32>
    %87 = math.exp %86 : vector<8x128xf32>
    %cst_26 = arith.constant 1.000000e+00 : f32
    %88 = vector.broadcast %cst_26 : f32 to vector<8x128xf32>
    %89 = arith.addf %88, %87 : vector<8x128xf32>
    %90 = arith.divf %88, %89 : vector<8x128xf32>
    %91 = vector.extract_strided_slice %71 {offsets = [0, 256], sizes = [8, 128], strides = [1, 1]} : vector<8x384xf32> to vector<8x128xf32>
    %92 = vector.extract_strided_slice %74 {offsets = [0, 256], sizes = [8, 128], strides = [1, 1]} : vector<8x384xf32> to vector<8x128xf32>
    %93 = arith.mulf %82, %92 : vector<8x128xf32>
    %94 = arith.addf %91, %93 : vector<8x128xf32>
    %95 = math.tanh %94 : vector<8x128xf32>
    %96 = arith.subf %66, %95 : vector<8x128xf32>
    %97 = arith.mulf %90, %96 : vector<8x128xf32>
    %98 = arith.addf %95, %97 : vector<8x128xf32>
    %c2_27 = arith.constant 2 : index
    %c0_28 = arith.constant 0 : index
    %c0_29 = arith.constant 0 : index
    %99 = vector.load %arg6[%c2_27, %c0_28, %c0_29] : memref<8x8x128xf32, #tpu.memory_space<vmem>>, vector<1x8x128xf32>
    %100 = vector.shape_cast %99 : vector<1x8x128xf32> to vector<8x128xf32>
    %101 = vector.shape_cast %98 : vector<8x128xf32> to vector<1x8x128xf32>
    tpu.vector_store %arg6[%c2_27, %c0_28, %c0_29], %101 {strides = array<i32>} : memref<8x8x128xf32, #tpu.memory_space<vmem>>, vector<1x8x128xf32>,
    %c3 = arith.constant 3 : index
    %c0_30 = arith.constant 0 : index
    %c0_31 = arith.constant 0 : index
    %102 = vector.load %arg2[%c3, %c0_30, %c0_31] : memref<8x8x384xf32, #tpu.memory_space<vmem>>, vector<1x8x384xf32>
    %103 = vector.shape_cast %102 : vector<1x8x384xf32> to vector<8x384xf32>
    %cst_32 = arith.constant dense<0.000000e+00> : vector<8x384xf32>
    %104 = tpu.matmul %98, %3, %cst_32 {dimension_numbers = #tpu.dot_dimension_numbers<[1], [0], [0], [1], [0, 0, 1, 1], [], []>} : vector<8x128xf32>, vector<128x384xf32>, vector<8x384xf32> -> vector<8x384xf32>
    %105 = vector.broadcast %4 : vector<1x384xf32> to vector<8x384xf32>
    %106 = arith.addf %104, %105 : vector<8x384xf32>
    %107 = vector.extract_strided_slice %103 {offsets = [0, 0], sizes = [8, 128], strides = [1, 1]} : vector<8x384xf32> to vector<8x128xf32>
    %108 = vector.extract_strided_slice %106 {offsets = [0, 0], sizes = [8, 128], strides = [1, 1]} : vector<8x384xf32> to vector<8x128xf32>
    %109 = arith.addf %107, %108 : vector<8x128xf32>
    %110 = arith.negf %109 : vector<8x128xf32>
    %111 = math.exp %110 : vector<8x128xf32>
    %cst_33 = arith.constant 1.000000e+00 : f32
    %112 = vector.broadcast %cst_33 : f32 to vector<8x128xf32>
    %113 = arith.addf %112, %111 : vector<8x128xf32>
    %114 = arith.divf %112, %113 : vector<8x128xf32>
    %115 = vector.extract_strided_slice %103 {offsets = [0, 128], sizes = [8, 128], strides = [1, 1]} : vector<8x384xf32> to vector<8x128xf32>
    %116 = vector.extract_strided_slice %106 {offsets = [0, 128], sizes = [8, 128], strides = [1, 1]} : vector<8x384xf32> to vector<8x128xf32>
    %117 = arith.addf %115, %116 : vector<8x128xf32>
    %118 = arith.negf %117 : vector<8x128xf32>
    %119 = math.exp %118 : vector<8x128xf32>
    %cst_34 = arith.constant 1.000000e+00 : f32
    %120 = vector.broadcast %cst_34 : f32 to vector<8x128xf32>
    %121 = arith.addf %120, %119 : vector<8x128xf32>
    %122 = arith.divf %120, %121 : vector<8x128xf32>
    %123 = vector.extract_strided_slice %103 {offsets = [0, 256], sizes = [8, 128], strides = [1, 1]} : vector<8x384xf32> to vector<8x128xf32>
    %124 = vector.extract_strided_slice %106 {offsets = [0, 256], sizes = [8, 128], strides = [1, 1]} : vector<8x384xf32> to vector<8x128xf32>
    %125 = arith.mulf %114, %124 : vector<8x128xf32>
    %126 = arith.addf %123, %125 : vector<8x128xf32>
    %127 = math.tanh %126 : vector<8x128xf32>
    %128 = arith.subf %98, %127 : vector<8x128xf32>
    %129 = arith.mulf %122, %128 : vector<8x128xf32>
    %130 = arith.addf %127, %129 : vector<8x128xf32>
    %c3_35 = arith.constant 3 : index
    %c0_36 = arith.constant 0 : index
    %c0_37 = arith.constant 0 : index
    %131 = vector.load %arg6[%c3_35, %c0_36, %c0_37] : memref<8x8x128xf32, #tpu.memory_space<vmem>>, vector<1x8x128xf32>
    %132 = vector.shape_cast %131 : vector<1x8x128xf32> to vector<8x128xf32>
    %133 = vector.shape_cast %130 : vector<8x128xf32> to vector<1x8x128xf32>
    tpu.vector_store %arg6[%c3_35, %c0_36, %c0_37], %133 {strides = array<i32>} : memref<8x8x128xf32, #tpu.memory_space<vmem>>, vector<1x8x128xf32>,
    %c4 = arith.constant 4 : index
    %c0_38 = arith.constant 0 : index
    %c0_39 = arith.constant 0 : index
    %134 = vector.load %arg2[%c4, %c0_38, %c0_39] : memref<8x8x384xf32, #tpu.memory_space<vmem>>, vector<1x8x384xf32>
    %135 = vector.shape_cast %134 : vector<1x8x384xf32> to vector<8x384xf32>
    %cst_40 = arith.constant dense<0.000000e+00> : vector<8x384xf32>
    %136 = tpu.matmul %130, %3, %cst_40 {dimension_numbers = #tpu.dot_dimension_numbers<[1], [0], [0], [1], [0, 0, 1, 1], [], []>} : vector<8x128xf32>, vector<128x384xf32>, vector<8x384xf32> -> vector<8x384xf32>
    %137 = vector.broadcast %4 : vector<1x384xf32> to vector<8x384xf32>
    %138 = arith.addf %136, %137 : vector<8x384xf32>
    %139 = vector.extract_strided_slice %135 {offsets = [0, 0], sizes = [8, 128], strides = [1, 1]} : vector<8x384xf32> to vector<8x128xf32>
    %140 = vector.extract_strided_slice %138 {offsets = [0, 0], sizes = [8, 128], strides = [1, 1]} : vector<8x384xf32> to vector<8x128xf32>
    %141 = arith.addf %139, %140 : vector<8x128xf32>
    %142 = arith.negf %141 : vector<8x128xf32>
    %143 = math.exp %142 : vector<8x128xf32>
    %cst_41 = arith.constant 1.000000e+00 : f32
    %144 = vector.broadcast %cst_41 : f32 to vector<8x128xf32>
    %145 = arith.addf %144, %143 : vector<8x128xf32>
    %146 = arith.divf %144, %145 : vector<8x128xf32>
    %147 = vector.extract_strided_slice %135 {offsets = [0, 128], sizes = [8, 128], strides = [1, 1]} : vector<8x384xf32> to vector<8x128xf32>
    %148 = vector.extract_strided_slice %138 {offsets = [0, 128], sizes = [8, 128], strides = [1, 1]} : vector<8x384xf32> to vector<8x128xf32>
    %149 = arith.addf %147, %148 : vector<8x128xf32>
    %150 = arith.negf %149 : vector<8x128xf32>
    %151 = math.exp %150 : vector<8x128xf32>
    %cst_42 = arith.constant 1.000000e+00 : f32
    %152 = vector.broadcast %cst_42 : f32 to vector<8x128xf32>
    %153 = arith.addf %152, %151 : vector<8x128xf32>
    %154 = arith.divf %152, %153 : vector<8x128xf32>
    %155 = vector.extract_strided_slice %135 {offsets = [0, 256], sizes = [8, 128], strides = [1, 1]} : vector<8x384xf32> to vector<8x128xf32>
    %156 = vector.extract_strided_slice %138 {offsets = [0, 256], sizes = [8, 128], strides = [1, 1]} : vector<8x384xf32> to vector<8x128xf32>
    %157 = arith.mulf %146, %156 : vector<8x128xf32>
    %158 = arith.addf %155, %157 : vector<8x128xf32>
    %159 = math.tanh %158 : vector<8x128xf32>
    %160 = arith.subf %130, %159 : vector<8x128xf32>
    %161 = arith.mulf %154, %160 : vector<8x128xf32>
    %162 = arith.addf %159, %161 : vector<8x128xf32>
    %c4_43 = arith.constant 4 : index
    %c0_44 = arith.constant 0 : index
    %c0_45 = arith.constant 0 : index
    %163 = vector.load %arg6[%c4_43, %c0_44, %c0_45] : memref<8x8x128xf32, #tpu.memory_space<vmem>>, vector<1x8x128xf32>
    %164 = vector.shape_cast %163 : vector<1x8x128xf32> to vector<8x128xf32>
    %165 = vector.shape_cast %162 : vector<8x128xf32> to vector<1x8x128xf32>
    tpu.vector_store %arg6[%c4_43, %c0_44, %c0_45], %165 {strides = array<i32>} : memref<8x8x128xf32, #tpu.memory_space<vmem>>, vector<1x8x128xf32>,
    %c5 = arith.constant 5 : index
    %c0_46 = arith.constant 0 : index
    %c0_47 = arith.constant 0 : index
    %166 = vector.load %arg2[%c5, %c0_46, %c0_47] : memref<8x8x384xf32, #tpu.memory_space<vmem>>, vector<1x8x384xf32>
    %167 = vector.shape_cast %166 : vector<1x8x384xf32> to vector<8x384xf32>
    %cst_48 = arith.constant dense<0.000000e+00> : vector<8x384xf32>
    %168 = tpu.matmul %162, %3, %cst_48 {dimension_numbers = #tpu.dot_dimension_numbers<[1], [0], [0], [1], [0, 0, 1, 1], [], []>} : vector<8x128xf32>, vector<128x384xf32>, vector<8x384xf32> -> vector<8x384xf32>
    %169 = vector.broadcast %4 : vector<1x384xf32> to vector<8x384xf32>
    %170 = arith.addf %168, %169 : vector<8x384xf32>
    %171 = vector.extract_strided_slice %167 {offsets = [0, 0], sizes = [8, 128], strides = [1, 1]} : vector<8x384xf32> to vector<8x128xf32>
    %172 = vector.extract_strided_slice %170 {offsets = [0, 0], sizes = [8, 128], strides = [1, 1]} : vector<8x384xf32> to vector<8x128xf32>
    %173 = arith.addf %171, %172 : vector<8x128xf32>
    %174 = arith.negf %173 : vector<8x128xf32>
    %175 = math.exp %174 : vector<8x128xf32>
    %cst_49 = arith.constant 1.000000e+00 : f32
    %176 = vector.broadcast %cst_49 : f32 to vector<8x128xf32>
    %177 = arith.addf %176, %175 : vector<8x128xf32>
    %178 = arith.divf %176, %177 : vector<8x128xf32>
    %179 = vector.extract_strided_slice %167 {offsets = [0, 128], sizes = [8, 128], strides = [1, 1]} : vector<8x384xf32> to vector<8x128xf32>
    %180 = vector.extract_strided_slice %170 {offsets = [0, 128], sizes = [8, 128], strides = [1, 1]} : vector<8x384xf32> to vector<8x128xf32>
    %181 = arith.addf %179, %180 : vector<8x128xf32>
    %182 = arith.negf %181 : vector<8x128xf32>
    %183 = math.exp %182 : vector<8x128xf32>
    %cst_50 = arith.constant 1.000000e+00 : f32
    %184 = vector.broadcast %cst_50 : f32 to vector<8x128xf32>
    %185 = arith.addf %184, %183 : vector<8x128xf32>
    %186 = arith.divf %184, %185 : vector<8x128xf32>
    %187 = vector.extract_strided_slice %167 {offsets = [0, 256], sizes = [8, 128], strides = [1, 1]} : vector<8x384xf32> to vector<8x128xf32>
    %188 = vector.extract_strided_slice %170 {offsets = [0, 256], sizes = [8, 128], strides = [1, 1]} : vector<8x384xf32> to vector<8x128xf32>
    %189 = arith.mulf %178, %188 : vector<8x128xf32>
    %190 = arith.addf %187, %189 : vector<8x128xf32>
    %191 = math.tanh %190 : vector<8x128xf32>
    %192 = arith.subf %162, %191 : vector<8x128xf32>
    %193 = arith.mulf %186, %192 : vector<8x128xf32>
    %194 = arith.addf %191, %193 : vector<8x128xf32>
    %c5_51 = arith.constant 5 : index
    %c0_52 = arith.constant 0 : index
    %c0_53 = arith.constant 0 : index
    %195 = vector.load %arg6[%c5_51, %c0_52, %c0_53] : memref<8x8x128xf32, #tpu.memory_space<vmem>>, vector<1x8x128xf32>
    %196 = vector.shape_cast %195 : vector<1x8x128xf32> to vector<8x128xf32>
    %197 = vector.shape_cast %194 : vector<8x128xf32> to vector<1x8x128xf32>
    tpu.vector_store %arg6[%c5_51, %c0_52, %c0_53], %197 {strides = array<i32>} : memref<8x8x128xf32, #tpu.memory_space<vmem>>, vector<1x8x128xf32>,
    %c6 = arith.constant 6 : index
    %c0_54 = arith.constant 0 : index
    %c0_55 = arith.constant 0 : index
    %198 = vector.load %arg2[%c6, %c0_54, %c0_55] : memref<8x8x384xf32, #tpu.memory_space<vmem>>, vector<1x8x384xf32>
    %199 = vector.shape_cast %198 : vector<1x8x384xf32> to vector<8x384xf32>
    %cst_56 = arith.constant dense<0.000000e+00> : vector<8x384xf32>
    %200 = tpu.matmul %194, %3, %cst_56 {dimension_numbers = #tpu.dot_dimension_numbers<[1], [0], [0], [1], [0, 0, 1, 1], [], []>} : vector<8x128xf32>, vector<128x384xf32>, vector<8x384xf32> -> vector<8x384xf32>
    %201 = vector.broadcast %4 : vector<1x384xf32> to vector<8x384xf32>
    %202 = arith.addf %200, %201 : vector<8x384xf32>
    %203 = vector.extract_strided_slice %199 {offsets = [0, 0], sizes = [8, 128], strides = [1, 1]} : vector<8x384xf32> to vector<8x128xf32>
    %204 = vector.extract_strided_slice %202 {offsets = [0, 0], sizes = [8, 128], strides = [1, 1]} : vector<8x384xf32> to vector<8x128xf32>
    %205 = arith.addf %203, %204 : vector<8x128xf32>
    %206 = arith.negf %205 : vector<8x128xf32>
    %207 = math.exp %206 : vector<8x128xf32>
    %cst_57 = arith.constant 1.000000e+00 : f32
    %208 = vector.broadcast %cst_57 : f32 to vector<8x128xf32>
    %209 = arith.addf %208, %207 : vector<8x128xf32>
    %210 = arith.divf %208, %209 : vector<8x128xf32>
    %211 = vector.extract_strided_slice %199 {offsets = [0, 128], sizes = [8, 128], strides = [1, 1]} : vector<8x384xf32> to vector<8x128xf32>
    %212 = vector.extract_strided_slice %202 {offsets = [0, 128], sizes = [8, 128], strides = [1, 1]} : vector<8x384xf32> to vector<8x128xf32>
    %213 = arith.addf %211, %212 : vector<8x128xf32>
    %214 = arith.negf %213 : vector<8x128xf32>
    %215 = math.exp %214 : vector<8x128xf32>
    %cst_58 = arith.constant 1.000000e+00 : f32
    %216 = vector.broadcast %cst_58 : f32 to vector<8x128xf32>
    %217 = arith.addf %216, %215 : vector<8x128xf32>
    %218 = arith.divf %216, %217 : vector<8x128xf32>
    %219 = vector.extract_strided_slice %199 {offsets = [0, 256], sizes = [8, 128], strides = [1, 1]} : vector<8x384xf32> to vector<8x128xf32>
    %220 = vector.extract_strided_slice %202 {offsets = [0, 256], sizes = [8, 128], strides = [1, 1]} : vector<8x384xf32> to vector<8x128xf32>
    %221 = arith.mulf %210, %220 : vector<8x128xf32>
    %222 = arith.addf %219, %221 : vector<8x128xf32>
    %223 = math.tanh %222 : vector<8x128xf32>
    %224 = arith.subf %194, %223 : vector<8x128xf32>
    %225 = arith.mulf %218, %224 : vector<8x128xf32>
    %226 = arith.addf %223, %225 : vector<8x128xf32>
    %c6_59 = arith.constant 6 : index
    %c0_60 = arith.constant 0 : index
    %c0_61 = arith.constant 0 : index
    %227 = vector.load %arg6[%c6_59, %c0_60, %c0_61] : memref<8x8x128xf32, #tpu.memory_space<vmem>>, vector<1x8x128xf32>
    %228 = vector.shape_cast %227 : vector<1x8x128xf32> to vector<8x128xf32>
    %229 = vector.shape_cast %226 : vector<8x128xf32> to vector<1x8x128xf32>
    tpu.vector_store %arg6[%c6_59, %c0_60, %c0_61], %229 {strides = array<i32>} : memref<8x8x128xf32, #tpu.memory_space<vmem>>, vector<1x8x128xf32>,
    %c7 = arith.constant 7 : index
    %c0_62 = arith.constant 0 : index
    %c0_63 = arith.constant 0 : index
    %230 = vector.load %arg2[%c7, %c0_62, %c0_63] : memref<8x8x384xf32, #tpu.memory_space<vmem>>, vector<1x8x384xf32>
    %231 = vector.shape_cast %230 : vector<1x8x384xf32> to vector<8x384xf32>
    %cst_64 = arith.constant dense<0.000000e+00> : vector<8x384xf32>
    %232 = tpu.matmul %226, %3, %cst_64 {dimension_numbers = #tpu.dot_dimension_numbers<[1], [0], [0], [1], [0, 0, 1, 1], [], []>} : vector<8x128xf32>, vector<128x384xf32>, vector<8x384xf32> -> vector<8x384xf32>
    %233 = vector.broadcast %4 : vector<1x384xf32> to vector<8x384xf32>
    %234 = arith.addf %232, %233 : vector<8x384xf32>
    %235 = vector.extract_strided_slice %231 {offsets = [0, 0], sizes = [8, 128], strides = [1, 1]} : vector<8x384xf32> to vector<8x128xf32>
    %236 = vector.extract_strided_slice %234 {offsets = [0, 0], sizes = [8, 128], strides = [1, 1]} : vector<8x384xf32> to vector<8x128xf32>
    %237 = arith.addf %235, %236 : vector<8x128xf32>
    %238 = arith.negf %237 : vector<8x128xf32>
    %239 = math.exp %238 : vector<8x128xf32>
    %cst_65 = arith.constant 1.000000e+00 : f32
    %240 = vector.broadcast %cst_65 : f32 to vector<8x128xf32>
    %241 = arith.addf %240, %239 : vector<8x128xf32>
    %242 = arith.divf %240, %241 : vector<8x128xf32>
    %243 = vector.extract_strided_slice %231 {offsets = [0, 128], sizes = [8, 128], strides = [1, 1]} : vector<8x384xf32> to vector<8x128xf32>
    %244 = vector.extract_strided_slice %234 {offsets = [0, 128], sizes = [8, 128], strides = [1, 1]} : vector<8x384xf32> to vector<8x128xf32>
    %245 = arith.addf %243, %244 : vector<8x128xf32>
    %246 = arith.negf %245 : vector<8x128xf32>
    %247 = math.exp %246 : vector<8x128xf32>
    %cst_66 = arith.constant 1.000000e+00 : f32
    %248 = vector.broadcast %cst_66 : f32 to vector<8x128xf32>
    %249 = arith.addf %248, %247 : vector<8x128xf32>
    %250 = arith.divf %248, %249 : vector<8x128xf32>
    %251 = vector.extract_strided_slice %231 {offsets = [0, 256], sizes = [8, 128], strides = [1, 1]} : vector<8x384xf32> to vector<8x128xf32>
    %252 = vector.extract_strided_slice %234 {offsets = [0, 256], sizes = [8, 128], strides = [1, 1]} : vector<8x384xf32> to vector<8x128xf32>
    %253 = arith.mulf %242, %252 : vector<8x128xf32>
    %254 = arith.addf %251, %253 : vector<8x128xf32>
    %255 = math.tanh %254 : vector<8x128xf32>
    %256 = arith.subf %226, %255 : vector<8x128xf32>
    %257 = arith.mulf %250, %256 : vector<8x128xf32>
    %258 = arith.addf %255, %257 : vector<8x128xf32>
    %c7_67 = arith.constant 7 : index
    %c0_68 = arith.constant 0 : index
    %c0_69 = arith.constant 0 : index
    %259 = vector.load %arg6[%c7_67, %c0_68, %c0_69] : memref<8x8x128xf32, #tpu.memory_space<vmem>>, vector<1x8x128xf32>
    %260 = vector.shape_cast %259 : vector<1x8x128xf32> to vector<8x128xf32>
    %261 = vector.shape_cast %258 : vector<8x128xf32> to vector<1x8x128xf32>
    tpu.vector_store %arg6[%c7_67, %c0_68, %c0_69], %261 {strides = array<i32>} : memref<8x8x128xf32, #tpu.memory_space<vmem>>, vector<1x8x128xf32>,
    %c0_70 = arith.constant 0 : index
    %c0_71 = arith.constant 0 : index
    %262 = vector.load %arg8[%c0_70, %c0_71] : memref<8x128xf32, #tpu.memory_space<vmem>>, vector<8x128xf32>
    tpu.vector_store %arg8[%c0_70, %c0_71], %258 {strides = array<i32>} : memref<8x128xf32, #tpu.memory_space<vmem>>, vector<8x128xf32>,
    %c0_i32_72 = arith.constant 0 : i32
    %263 = arith.cmpi eq, %arg1, %c0_i32_72 : i32
    %264 = arith.extui %263 : i1 to i32
    %c0_i32_73 = arith.constant 0 : i32
    %265 = arith.cmpi ne, %264, %c0_i32_73 : i32
    scf.if %265 {
      %c0_74 = arith.constant 0 : index
      %c0_75 = arith.constant 0 : index
      %266 = vector.load %arg7[%c0_74, %c0_75] : memref<8x128xf32, #tpu.memory_space<vmem>>, vector<8x128xf32>
      tpu.vector_store %arg7[%c0_74, %c0_75], %258 {strides = array<i32>} : memref<8x128xf32, #tpu.memory_space<vmem>>, vector<8x128xf32>,
    } else {
    }
    return
  }
  func.func @transform_0(%arg0: i32, %arg1: i32) -> (i32, i32, i32) {
    %c0_i32 = arith.constant 0 : i32
    %c0_i32_0 = arith.constant 0 : i32
    return %arg1, %arg0, %c0_i32 : i32, i32, i32
  }
  func.func @transform_1(%arg0: i32, %arg1: i32) -> (i32, i32) {
    %c0_i32 = arith.constant 0 : i32
    %c0_i32_0 = arith.constant 0 : i32
    return %arg0, %c0_i32 : i32, i32
  }
  func.func @transform_2(%arg0: i32, %arg1: i32) -> (i32, i32) {
    %c0_i32 = arith.constant 0 : i32
    %c0_i32_0 = arith.constant 0 : i32
    %c0_i32_1 = arith.constant 0 : i32
    return %c0_i32, %c0_i32_0 : i32, i32
  }
  func.func @transform_3(%arg0: i32, %arg1: i32) -> (i32, i32) {
    %c0_i32 = arith.constant 0 : i32
    %c0_i32_0 = arith.constant 0 : i32
    %c0_i32_1 = arith.constant 0 : i32
    return %c0_i32, %c0_i32_0 : i32, i32
  }
  func.func @transform_4(%arg0: i32, %arg1: i32) -> (i32, i32, i32) {
    %c0_i32 = arith.constant 0 : i32
    %c0_i32_0 = arith.constant 0 : i32
    return %arg1, %arg0, %c0_i32 : i32, i32, i32
  }
  func.func @transform_5(%arg0: i32, %arg1: i32) -> (i32, i32) {
    %c0_i32 = arith.constant 0 : i32
    %c0_i32_0 = arith.constant 0 : i32
    return %arg0, %c0_i32 : i32, i32
  }
}

</mosaic_0001>

<bundles_post_ra>
// kernel: tpu_custom_call.1
= control target key start
LH: loop header
LB: loop body
LE: loop exit
PB: predicated region body
PF: predicated region fallthrough
CT: control target
= control target key end

     0   :  { %11 = vsyncpa [#allocation4], 0  ;;  %s2003_s0 = inlined_call_operand.hbm [shape: f32[8,8,384], index: 0, kind: input, shape index: {}]   ;;  %s2004_s1 = inlined_call_operand.hbm [shape: f32[8,128], index: 1, kind: input, shape index: {}]   ;;  %s2005_s2 = inlined_call_operand.hbm [shape: f32[128,384], index: 2, kind: input, shape index: {}]   ;;  %s2006_s3 = inlined_call_operand.hbm [shape: f32[1,384], index: 3, kind: input, shape index: {}]   ;;  %s2007_s4 = inlined_call_operand.hbm [shape: f32[8,8,128], index: 4, kind: output, shape index: {0}]   ;;  %s2008_s5 = inlined_call_operand.hbm [shape: f32[8,128], index: 5, kind: output, shape index: {1}]  }
   0x1   :  { %12 = vsyncpa [#allocation7], 0 }
   0x2   :  { %13 = vsyncpa [#allocation10], 0 }
   0x3   :  { %14 = vsyncpa [#allocation5], 0  ;;  %s34_s20 = sshll.u32 %s2004_s1, 4  ;;  %s35_s20 = int_to_ptr.hbm [resolvable:$true] %s34_s20 }
   0x4   :  { %15 = vsyncpa [#allocation13], 0  ;;  %s1387_s21 = smov [#allocation6]   ;;  %s20_s25 = sshll.u32 %s2003_s0, 4  ;;  %s21_s25 = int_to_ptr.hbm [resolvable:$true] %s20_s25 }
   0x5   :  { %s36_s22 = sshll.u32 %s1387_s21, 4  ;;  %s1388_s26 = smov [#allocation3]   ;;  %s37_s22 = int_to_ptr.vmem [resolvable:$true] %s36_s22 }
   0x6   :  { %39 = dma.hbm_to_vmem [thread:$0]  %s35_s20, 128, %s37_s22, [#allocation7]  }
   0x7   :  { %s22_s27 = sshll.u32 %s1388_s26, 4  ;;  %s1389_s28 = smov 384   ;;  %s23_s27 = int_to_ptr.vmem [resolvable:$true] %s22_s27 }
   0x8   :  { %s1390_s29 = smov 24   ;;  %s44_s1 = sshll.u32 %s2005_s2, 4  ;;  %s45_s1 = int_to_ptr.hbm [resolvable:$true] %s44_s1 }
   0x9   :  { %28 = dma.hbm_to_vmem [thread:$0]  %s21_s25, 3072, %s23_s27, [#allocation4], %s1389_s28, %s1389_s28, %s1390_s29  }
   0xa   :  { %s1391_s7 = smov [#allocation8]   ;;  %s58_s0 = sshll.u32 %s2006_s3, 4  ;;  %s59_s0 = int_to_ptr.hbm [resolvable:$true] %s58_s0 }
   0xb   :  { %s46_s8 = sshll.u32 %s1391_s7, 4  ;;  %s1392_s11 = smov [#allocation9]   ;;  %s47_s8 = int_to_ptr.vmem [resolvable:$true] %s46_s8 }
   0xc   :  { %52 = dma.hbm_to_vmem [thread:$0]  %s45_s1, 6144, %s47_s8, [#allocation7], %s1389_s28, %s1389_s28, %s1390_s29  }
   0xd   :  { %s60_s12 = sshll.u32 %s1392_s11, 4  ;;  %s61_s12 = int_to_ptr.vmem [resolvable:$true] %s60_s12 }
   0xe   :  { %63 = dma.hbm_to_vmem [thread:$0]  %s59_s0, 48, %s61_s12, [#allocation10]  }
   0xf   :  { %1377 = dma.done.wait [#allocation4], 3072  }
  0x10   :  { %1378 = vsyncadd [#allocation4], 4294964224 }
  0x11   :  { %1379 = dma.done.wait [#allocation7], 6272  }
  0x12   :  { %1380 = vsyncadd [#allocation7], 4294961024 }
  0x13   :  { %1381 = dma.done.wait [#allocation10], 48  }
  0x14   :  { %1382 = vsyncadd [#allocation10], 4294967248  ;;  %v1439_v0 = vld [vmem:[#allocation8 + $0x168] sm:$0xff]  ;;  %v1441_v1 = vld [vmem:[#allocation8 + $0x170] sm:$0xff]  ;;  %s1393_s2 = smov [#allocation11]   ;;  %s1048_s15 = sshll.u32 %s2007_s4, 4  ;;  %s1049_s15 = int_to_ptr.hbm [resolvable:$true] %s1048_s15 }
  0x15   :  { %v1443_v2 = vld [vmem:[#allocation8 + $0x150] sm:$0xff]  ;;  %146 = vmatpush.msra.mxu0 %v1439_v0  ;;  %166 = vmatpush.msra.mxu1 %v1441_v1  ;;  %v1447_v3 = vld [vmem:[#allocation8 + $0x158] sm:$0xff]  ;;  %v1451_v5 = vld [vmem:[#allocation8 + $0x140] sm:$0xff]  ;;  %s1046_s3 = sshll.u32 %s1393_s2, 4  ;;  %s1394_s16 = smov [#allocation12]   ;;  %s1047_s3 = int_to_ptr.vmem [resolvable:$true] %s1046_s3 }
  0x16   :  { %v1449_v4 = vld [vmem:[#allocation8 + $0x138] sm:$0xff]  ;;  %257 = vmatpush.msra.mxu3 %v1439_v0  ;;  %v1456_v6 = vld [vmem:[#allocation8 + $0x120] sm:$0xff]  ;;  %v1458_v7 = vld [vmem:[#allocation8 + $0x128] sm:$0xff]  ;;  %s1060_s17 = sshll.u32 %s1394_s16, 4  ;;  %s1062_s20 = sshll.u32 %s2008_s5, 4  ;;  %s1061_s17 = int_to_ptr.vmem [resolvable:$true] %s1060_s17  ;;  %s1063_s20 = int_to_ptr.hbm [resolvable:$true] %s1062_s20 }
  0x17   :  { %147 = vmatpush.msra.mxu0 %v1443_v2  ;;  %167 = vmatpush.msra.mxu1 %v1447_v3  ;;  %v1463_v8 = vld [vmem:[#allocation8 + $0x108] sm:$0xff]  ;;  %v1465_v9 = vld [vmem:[#allocation8 + $0x110] sm:$0xff]  ;;  %v1472_v11 = vld [vmem:[#allocation8 + $0xf8] sm:$0xff]  ;;  %s1395_s21 = smov 128   ;;  %s1396_s22 = smov 8  }
  0x18   :  { %258 = vmatpush.msra.mxu3 %v1443_v2  ;;  %v1470_v10 = vld [vmem:[#allocation8 + $0xf0] sm:$0xff]  ;;  %v1474_v12 = vld [vmem:[#allocation8 + $0x178] sm:$0xff]  ;;  %v1479_v13 = vld [vmem:[#allocation8 + $0x160] sm:$0xff] }
  0x19   :  { %148 = vmatpush.msra.mxu0 %v1449_v4  ;;  %168 = vmatpush.msra.mxu1 %v1451_v5  ;;  %v1481_v14 = vld [vmem:[#allocation8 + $0xd8] sm:$0xff]  ;;  %v1483_v15 = vld [vmem:[#allocation8 + $0xe0] sm:$0xff]  ;;  %v1489_v16 = vld [vmem:[#allocation8 + $0x148] sm:$0xff] }
  0x1a   :  { %259 = vmatpush.msra.mxu3 %v1449_v4  ;;  %186 = vmatpush.msra.mxu2 %v1474_v12  ;;  %v1491_v17 = vld [vmem:[#allocation8 + $0xc0] sm:$0xff]  ;;  %v1493_v18 = vld [vmem:[#allocation8 + $0xc8] sm:$0xff]  ;;  %v1499_v19 = vld [vmem:[#allocation8 + $0x130] sm:$0xff] }
  0x1b   :  { %149 = vmatpush.msra.mxu0 %v1456_v6  ;;  %169 = vmatpush.msra.mxu1 %v1458_v7  ;;  %v1501_v20 = vld [vmem:[#allocation8 + $0xa8] sm:$0xff]  ;;  %v1503_v21 = vld [vmem:[#allocation8 + $0xb0] sm:$0xff]  ;;  %v1509_v22 = vld [vmem:[#allocation8 + $0x118] sm:$0xff] }
  0x1c   :  { %260 = vmatpush.msra.mxu3 %v1456_v6  ;;  %187 = vmatpush.msra.mxu2 %v1479_v13  ;;  %v1511_v23 = vld [vmem:[#allocation8 + $0x90] sm:$0xff]  ;;  %v1513_v24 = vld [vmem:[#allocation8 + $0x98] sm:$0xff]  ;;  %v1519_v25 = vld [vmem:[#allocation8 + $0x100] sm:$0xff] }
  0x1d   :  { %150 = vmatpush.msra.mxu0 %v1463_v8  ;;  %170 = vmatpush.msra.mxu1 %v1465_v9  ;;  %v1521_v26 = vld [vmem:[#allocation8 + $0x78] sm:$0xff]  ;;  %v1523_v27 = vld [vmem:[#allocation8 + $0x80] sm:$0xff]  ;;  %v1529_v28 = vld [vmem:[#allocation8 + $0xe8] sm:$0xff] }
  0x1e   :  { %261 = vmatpush.msra.mxu3 %v1463_v8  ;;  %188 = vmatpush.msra.mxu2 %v1489_v16  ;;  %v1531_v29 = vld [vmem:[#allocation8 + $0x60] sm:$0xff]  ;;  %v1533_v30 = vld [vmem:[#allocation8 + $0x68] sm:$0xff]  ;;  %v1539_v31 = vld [vmem:[#allocation8 + $0xd0] sm:$0xff] }
  0x1f   :  { %151 = vmatpush.msra.mxu0 %v1470_v10  ;;  %171 = vmatpush.msra.mxu1 %v1472_v11  ;;  %v1541_v32 = vld [vmem:[#allocation8 + $0x48] sm:$0xff]  ;;  %v1543_v33 = vld [vmem:[#allocation8 + $0x50] sm:$0xff]  ;;  %v1549_v34 = vld [vmem:[#allocation8 + $0xb8] sm:$0xff] }
  0x20   :  { %262 = vmatpush.msra.mxu3 %v1470_v10  ;;  %189 = vmatpush.msra.mxu2 %v1499_v19  ;;  %v1551_v35 = vld [vmem:[#allocation8 + $0x30] sm:$0xff]  ;;  %v1553_v36 = vld [vmem:[#allocation8 + $0x38] sm:$0xff]  ;;  %v1559_v37 = vld [vmem:[#allocation8 + $0xa0] sm:$0xff] }
  0x21   :  { %152 = vmatpush.msra.mxu0 %v1481_v14  ;;  %172 = vmatpush.msra.mxu1 %v1483_v15  ;;  %2029 = vst [vmem:[#allocation19_spill] sm:$0xff] %v1551_v35  ;;  %v1561_v38 = vld [vmem:[#allocation8 + $0x18] sm:$0xff]  ;;  %v1563_v39 = vld [vmem:[#allocation8 + $0x20] sm:$0xff]  ;;  %v1569_v40 = vld [vmem:[#allocation8 + $0x88] sm:$0xff] }
  0x22   :  { %263 = vmatpush.msra.mxu3 %v1481_v14  ;;  %190 = vmatpush.msra.mxu2 %v1509_v22  ;;  %2030 = vst [vmem:[#allocation20_spill] sm:$0xff] %v1553_v36  ;;  %v1571_v41 = vld [vmem:[#allocation8] sm:$0xff]  ;;  %v1573_v42 = vld [vmem:[#allocation8 + $0x8] sm:$0xff]  ;;  %v1579_v43 = vld [vmem:[#allocation6] sm:$0xff] }
  0x23   :  { %153 = vmatpush.msra.mxu0 %v1491_v17  ;;  %173 = vmatpush.msra.mxu1 %v1493_v18  ;;  %2031 = vst [vmem:[#allocation21_spill] sm:$0xff] %v1561_v38  ;;  %v1582_v44 = vld [vmem:[#allocation8 + $0x70] sm:$0xff]  ;;  %v1589_v45 = vld [vmem:[#allocation8 + $0x58] sm:$0xff]  ;;  %v1593_v46 = vld [vmem:[#allocation8 + $0x40] sm:$0xff] }
  0x24   :  { %264 = vmatpush.msra.mxu3 %v1491_v17  ;;  %191 = vmatpush.msra.mxu2 %v1519_v25  ;;  %2032 = vst [vmem:[#allocation22_spill] sm:$0xff] %v1563_v39  ;;  %v1599_v47 = vld [vmem:[#allocation8 + $0x28] sm:$0xff]  ;;  %v1605_v48 = vld [vmem:[#allocation8 + $0x10] sm:$0xff]  ;;  %v134_v49 = vld [vmem:[#allocation9] sm:$0x7] }
  0x25   :  { %154 = vmatpush.msra.mxu0 %v1501_v20  ;;  %174 = vmatpush.msra.mxu1 %v1503_v21  ;;  %2033 = vst [vmem:[#allocation23_spill] sm:$0xff] %v1571_v41  ;;  %v1716_v50 = vperm.slane %v134_v49, 0  ;;  %v1718_v51 = vperm.slane %v134_v49, 1  ;;  %v136_v52 = vld [vmem:[#allocation3] sm:$0xff]  ;;  %v137_v54 = vld [vmem:[#allocation3 + $0x8] sm:$0xff] }
  0x26   :  { %265 = vmatpush.msra.mxu3 %v1501_v20  ;;  %192 = vmatpush.msra.mxu2 %v1529_v28  ;;  %2034 = vst [vmem:[#allocation24_spill] sm:$0xff] %v1573_v42 }
  0x27   :  { %155 = vmatpush.msra.mxu0 %v1511_v23  ;;  %175 = vmatpush.msra.mxu1 %v1513_v24  ;;  %2035 = vst [vmem:[#allocation25_spill] sm:$0xff] %v1599_v47 }
  0x28   :  { %266 = vmatpush.msra.mxu3 %v1511_v23  ;;  %193 = vmatpush.msra.mxu2 %v1539_v31  ;;  %2036 = vst [vmem:[#allocation26_spill] sm:$0xff] %v1605_v48 }
  0x29   :  { %156 = vmatpush.msra.mxu0 %v1521_v26  ;;  %176 = vmatpush.msra.mxu1 %v1523_v27  ;;  %2037 = vst [vmem:[#allocation27_spill] sm:$0xff] %v1716_v50 }
  0x2a   :  { %267 = vmatpush.msra.mxu3 %v1521_v26  ;;  %194 = vmatpush.msra.mxu2 %v1549_v34  ;;  %2038 = vst [vmem:[#allocation28_spill] sm:$0xff] %v1718_v51 }
  0x2b   :  { %157 = vmatpush.msra.mxu0 %v1531_v29  ;;  %177 = vmatpush.msra.mxu1 %v1533_v30 }
  0x2c   :  { %268 = vmatpush.msra.mxu3 %v1531_v29  ;;  %195 = vmatpush.msra.mxu2 %v1559_v37 }
  0x2d   :  { %158 = vmatpush.msra.mxu0 %v1541_v32  ;;  %178 = vmatpush.msra.mxu1 %v1543_v33 }
  0x2e   :  { %269 = vmatpush.msra.mxu3 %v1541_v32  ;;  %196 = vmatpush.msra.mxu2 %v1569_v40 }
  0x2f   :  { %159 = vmatpush.msra.mxu0 %v1551_v35  ;;  %179 = vmatpush.msra.mxu1 %v1553_v36 }
  0x30   :  { %270 = vmatpush.msra.mxu3 %v1551_v35  ;;  %197 = vmatpush.msra.mxu2 %v1582_v44 }
  0x31   :  { %160 = vmatpush.msra.mxu0 %v1561_v38  ;;  %180 = vmatpush.msra.mxu1 %v1563_v39 }
  0x32   :  { %271 = vmatpush.msra.mxu3 %v1561_v38  ;;  %198 = vmatpush.msra.mxu2 %v1589_v45 }
  0x33   :  { %161 = vmatpush.msra.mxu0 %v1571_v41  ;;  %181 = vmatpush.msra.mxu1 %v1573_v42 }
  0x34   :  { %162 = vmatmul.f32.vlgmr.msra.gmra.mxu0 %v1579_v43  ;;  %182 = vmatmul.f32.vlgmr.msra.gmra.mxu1 %v1579_v43 }
  0x35   :  { %277 = vmatpush.msrb.mxu0 %v1441_v1  ;;  %297 = vmatpush.msrb.mxu1 %v1474_v12 }
  0x36   :  { %272 = vmatpush.msra.mxu3 %v1571_v41  ;;  %199 = vmatpush.msra.mxu2 %v1593_v46 }
  0x37   :  { %278 = vmatpush.msrb.mxu0 %v1447_v3  ;;  %298 = vmatpush.msrb.mxu1 %v1479_v13 }
  0x38   :  { %389 = vmatpush.msrb.mxu3 %v1441_v1  ;;  %200 = vmatpush.msra.mxu2 %v1599_v47 }
  0x39   :  { %279 = vmatpush.msrb.mxu0 %v1451_v5  ;;  %299 = vmatpush.msrb.mxu1 %v1489_v16 }
  0x3a   :  { %390 = vmatpush.msrb.mxu3 %v1447_v3  ;;  %201 = vmatpush.msra.mxu2 %v1605_v48 }
  0x3b   :  { %280 = vmatpush.msrb.mxu0 %v1458_v7  ;;  %300 = vmatpush.msrb.mxu1 %v1499_v19 }
  0x3c   :  { %391 = vmatpush.msrb.mxu3 %v1451_v5  ;;  %202 = vmatmul.f32.vlgmr.msra.gmra.mxu2 %v1579_v43 }
  0x3d   :  { %281 = vmatpush.msrb.mxu0 %v1465_v9  ;;  %301 = vmatpush.msrb.mxu1 %v1509_v22 }
  0x3e   :  { %369 = vmatpush.msrb.mxu2 %v1439_v0  ;;  %392 = vmatpush.msrb.mxu3 %v1458_v7 }
  0x3f   :  { %282 = vmatpush.msrb.mxu0 %v1472_v11  ;;  %302 = vmatpush.msrb.mxu1 %v1519_v25 }
  0x40   :  { %370 = vmatpush.msrb.mxu2 %v1443_v2  ;;  %393 = vmatpush.msrb.mxu3 %v1465_v9 }
  0x41   :  { %283 = vmatpush.msrb.mxu0 %v1483_v15  ;;  %303 = vmatpush.msrb.mxu1 %v1529_v28 }
  0x42   :  { %371 = vmatpush.msrb.mxu2 %v1449_v4  ;;  %394 = vmatpush.msrb.mxu3 %v1472_v11 }
  0x43   :  { %284 = vmatpush.msrb.mxu0 %v1493_v18  ;;  %304 = vmatpush.msrb.mxu1 %v1539_v31 }
  0x44   :  { %372 = vmatpush.msrb.mxu2 %v1456_v6  ;;  %395 = vmatpush.msrb.mxu3 %v1483_v15 }
  0x45   :  { %285 = vmatpush.msrb.mxu0 %v1503_v21  ;;  %305 = vmatpush.msrb.mxu1 %v1549_v34 }
  0x46   :  { %373 = vmatpush.msrb.mxu2 %v1463_v8  ;;  %396 = vmatpush.msrb.mxu3 %v1493_v18 }
  0x47   :  { %286 = vmatpush.msrb.mxu0 %v1513_v24  ;;  %306 = vmatpush.msrb.mxu1 %v1559_v37 }
  0x48   :  { %374 = vmatpush.msrb.mxu2 %v1470_v10  ;;  %397 = vmatpush.msrb.mxu3 %v1503_v21 }
  0x49   :  { %287 = vmatpush.msrb.mxu0 %v1523_v27  ;;  %307 = vmatpush.msrb.mxu1 %v1569_v40 }
  0x4a   :  { %375 = vmatpush.msrb.mxu2 %v1481_v14  ;;  %398 = vmatpush.msrb.mxu3 %v1513_v24 }
  0x4b   :  { %288 = vmatpush.msrb.mxu0 %v1533_v30  ;;  %308 = vmatpush.msrb.mxu1 %v1582_v44 }
  0x4c   :  { %376 = vmatpush.msrb.mxu2 %v1491_v17  ;;  %399 = vmatpush.msrb.mxu3 %v1523_v27 }
  0x4d   :  { %289 = vmatpush.msrb.mxu0 %v1543_v33  ;;  %309 = vmatpush.msrb.mxu1 %v1589_v45 }
  0x4e   :  { %377 = vmatpush.msrb.mxu2 %v1501_v20  ;;  %400 = vmatpush.msrb.mxu3 %v1533_v30 }
  0x4f   :  { %290 = vmatpush.msrb.mxu0 %v1553_v36  ;;  %310 = vmatpush.msrb.mxu1 %v1593_v46 }
  0x50   :  { %378 = vmatpush.msrb.mxu2 %v1511_v23  ;;  %401 = vmatpush.msrb.mxu3 %v1543_v33 }
  0x51   :  { %291 = vmatpush.msrb.mxu0 %v1563_v39  ;;  %311 = vmatpush.msrb.mxu1 %v1599_v47 }
  0x52   :  { %379 = vmatpush.msrb.mxu2 %v1521_v26  ;;  %402 = vmatpush.msrb.mxu3 %v1553_v36 }
  0x53   :  { %292 = vmatpush.msrb.mxu0 %v1573_v42  ;;  %312 = vmatpush.msrb.mxu1 %v1605_v48 }
  0x54   :  { %380 = vmatpush.msrb.mxu2 %v1531_v29  ;;  %403 = vmatpush.msrb.mxu3 %v1563_v39 }
  0x55   :  { %409 = vmatpush.msra.mxu0 %v1474_v12  ;;  %481 = vmatpush.msra.mxu1 %v1439_v0 }
  0x56   :  { %381 = vmatpush.msrb.mxu2 %v1541_v32  ;;  %404 = vmatpush.msrb.mxu3 %v1573_v42 }
  0x57   :  { %410 = vmatpush.msra.mxu0 %v1479_v13  ;;  %482 = vmatpush.msra.mxu1 %v1443_v2 }
  0x58   :  { %382 = vmatpush.msrb.mxu2 %v1551_v35 }
  0x59   :  { %411 = vmatpush.msra.mxu0 %v1489_v16  ;;  %483 = vmatpush.msra.mxu1 %v1449_v4 }
  0x5a   :  { %383 = vmatpush.msrb.mxu2 %v1561_v38 }
  0x5b   :  { %412 = vmatpush.msra.mxu0 %v1499_v19  ;;  %484 = vmatpush.msra.mxu1 %v1456_v6 }
  0x5c   :  { %384 = vmatpush.msrb.mxu2 %v1571_v41 }
  0x5d   :  { %413 = vmatpush.msra.mxu0 %v1509_v22  ;;  %485 = vmatpush.msra.mxu1 %v1463_v8 }
  0x5e   :  { %501 = vmatpush.msra.mxu2 %v1441_v1 }
  0x5f   :  { %414 = vmatpush.msra.mxu0 %v1519_v25  ;;  %486 = vmatpush.msra.mxu1 %v1470_v10 }
  0x60   :  { %502 = vmatpush.msra.mxu2 %v1447_v3 }
  0x61   :  { %415 = vmatpush.msra.mxu0 %v1529_v28  ;;  %487 = vmatpush.msra.mxu1 %v1481_v14 }
  0x62   :  { %503 = vmatpush.msra.mxu2 %v1451_v5 }
  0x63   :  { %416 = vmatpush.msra.mxu0 %v1539_v31  ;;  %488 = vmatpush.msra.mxu1 %v1491_v17 }
  0x64   :  { %504 = vmatpush.msra.mxu2 %v1458_v7 }
  0x65   :  { %417 = vmatpush.msra.mxu0 %v1549_v34  ;;  %489 = vmatpush.msra.mxu1 %v1501_v20 }
  0x66   :  { %505 = vmatpush.msra.mxu2 %v1465_v9 }
  0x67   :  { %418 = vmatpush.msra.mxu0 %v1559_v37  ;;  %490 = vmatpush.msra.mxu1 %v1511_v23 }
  0x68   :  { %506 = vmatpush.msra.mxu2 %v1472_v11 }
  0x69   :  { %419 = vmatpush.msra.mxu0 %v1569_v40  ;;  %491 = vmatpush.msra.mxu1 %v1521_v26 }
  0x6a   :  { %507 = vmatpush.msra.mxu2 %v1483_v15 }
  0x6b   :  { %420 = vmatpush.msra.mxu0 %v1582_v44  ;;  %492 = vmatpush.msra.mxu1 %v1531_v29 }
  0x6c   :  { %508 = vmatpush.msra.mxu2 %v1493_v18 }
  0x6d   :  { %421 = vmatpush.msra.mxu0 %v1589_v45  ;;  %493 = vmatpush.msra.mxu1 %v1541_v32 }
  0x6e   :  { %509 = vmatpush.msra.mxu2 %v1503_v21 }
  0x6f   :  { %422 = vmatpush.msra.mxu0 %v1593_v46  ;;  %494 = vmatpush.msra.mxu1 %v1551_v35 }
  0x70   :  { %510 = vmatpush.msra.mxu2 %v1513_v24 }
  0x71   :  { %423 = vmatpush.msra.mxu0 %v1599_v47  ;;  %495 = vmatpush.msra.mxu1 %v1561_v38  ;;  %v1722_v47 = vperm.slane %v134_v49, 2 }
  0x72   :  { %511 = vmatpush.msra.mxu2 %v1523_v27 }
  0x73   :  { %424 = vmatpush.msra.mxu0 %v1605_v48  ;;  %496 = vmatpush.msra.mxu1 %v1571_v41 }
  0x74   :  { %512 = vmatpush.msra.mxu2 %v1533_v30 }
  0x76   :  { %513 = vmatpush.msra.mxu2 %v1543_v33 }
  0x78   :  { %514 = vmatpush.msra.mxu2 %v1553_v36 }
  0x7a   :  { %515 = vmatpush.msra.mxu2 %v1563_v39 }
  0x7c   :  { %516 = vmatpush.msra.mxu2 %v1573_v42 }
  0xb1   :  { %v163_v53 = vpop.f32.mrf.mxu0  ;;  %v183_v55 = vpop.f32.mrf.mxu1 }
  0xb2   :  { %v164_v56 = vadd.f32 %v163_v53, %v1716_v50  ;;  %v184_v57 = vadd.f32 %v183_v55, %v1718_v51 }
  0xb4   :  { %v206_v58 = vadd.f32 %v164_v56, %v136_v52  ;;  %v226_v59 = vadd.f32 %v184_v57, %v137_v54 }
  0xb6   :  { %v1079_v60 = vmul.f32 -1.442695, %v206_v58  ;;  %v1080_v61 = vmul.f32 -1.442695, %v226_v59 }
  0xb8   :  { %1105 = vpow2.f32 %v1079_v60 }
  0xb9   :  { %1107 = vpow2.f32 %v1080_v61 }
  0xbe   :  { %v1106_v62 = vpop.eup %1105 }
  0xbf   :  { %v1108_v63 = vpop.eup %1107  ;;  %v210_v42 = vadd.f32 1.0, %v1106_v62  ;;  %v203_v55 = vpop.f32.mrf.mxu2  ;;  %v138_v62 = vld [vmem:[#allocation3 + $0x10] sm:$0xff] }
  0xc0   :  { %v230_v41 = vadd.f32 1.0, %v1108_v63  ;;  %v204_v57 = vadd.f32 %v203_v55, %v1722_v47 }
  0xc1   :  { %1109 = vrcp.f32 %v210_v42  ;;  %v222_v52 = vand.u32 2147483648, %v210_v42  ;;  %v220_v56 = vand.u32 2147483647, %v210_v42  ;;  %vm216_vm1 = vweird.f32 %v210_v42 }
  0xc2   :  { %1111 = vrcp.f32 %v230_v41  ;;  %vm236_vm4 = vweird.f32 %v230_v41  ;;  %v242_v36 = vand.u32 2147483648, %v230_v41  ;;  %v240_v35 = vand.u32 2147483647, %v230_v41 }
  0xc3   :  { %v223_v60 = vor.u32 1.1754944e-38, %v222_v52  ;;  %vm221_vm3 = vcmp.eq.f32.partialorder %v220_v56, 8.507059e+37 }
  0xc4   :  { %v243_v55 = vor.u32 1.1754944e-38, %v242_v36  ;;  %vm241_vm7 = vcmp.eq.f32.partialorder %v240_v35, 8.507059e+37  ;;  %v2039_v35 = vld [vmem:[#allocation19_spill] sm:$0xff]  ;;  %v2040_v36 = vld [vmem:[#allocation20_spill] sm:$0xff] }
  0xc7   :  { %v1110_v48 = vpop.eup %1109 }
  0xc8   :  { %v1112_v39 = vpop.eup %1111  ;;  %v212_v38 = vmul.f32 %v1110_v48, %v210_v42  ;;  %vm217_vm0 = vweird.f32 %v1110_v48 }
  0xc9   :  { %v232_v50 = vmul.f32 %v1112_v39, %v230_v41  ;;  %vm218_vm2 = vmor %vm216_vm1, %vm217_vm0  ;;  %vm237_vm5 = vweird.f32 %v1112_v39  ;;  %v2042_v41 = vld [vmem:[#allocation21_spill] sm:$0xff] }
  0xca   :  { %v213_v53 = vsub.f32 1.0, %v212_v38  ;;  %vm238_vm6 = vmor %vm236_vm4, %vm237_vm5 }
  0xcb   :  { %v233_v59 = vsub.f32 1.0, %v232_v50 }
  0xcc   :  { %v214_v54 = vmul.f32 %v1110_v48, %v213_v53 }
  0xcd   :  { %v234_v51 = vmul.f32 %v1112_v39, %v233_v59  ;;  %v255_v59 = vld [vmem:[#allocation3 + $0x20] sm:$0xff] }
  0xce   :  { %v215_v58 = vadd.f32 %v1110_v48, %v214_v54 }
  0xcf   :  { %v235_v53 = vadd.f32 %v1112_v39, %v234_v51  ;;  %v2044_v51 = vld [vmem:[#allocation26_spill] sm:$0xff] }
  0xd0   :  { %v219_v61 = vsel %vm218_vm2, %v1110_v48, %v215_v58  ;;  %v2046_v58 = vld [vmem:[#allocation24_spill] sm:$0xff] }
  0xd1   :  { %v224_v63 = vsel %vm221_vm3, %v223_v60, %v219_v61  ;;  %v239_v54 = vsel %vm238_vm6, %v1112_v39, %v235_v53  ;;  %v2041_v39 = vld [vmem:[#allocation25_spill] sm:$0xff]  ;;  %v2047_v61 = vld [vmem:[#allocation28_spill] sm:$0xff] }
  0xd2   :  { %v246_v49 = vmul.f32 %v224_v63, %v204_v57  ;;  %v244_v48 = vsel %vm241_vm7, %v243_v55, %v239_v54  ;;  %v2045_v57 = vld [vmem:[#allocation23_spill] sm:$0xff] }
  0xd3   :  { %v2048_v55 = vld [vmem:[#allocation27_spill] sm:$0xff] }
  0xd4   :  { %v247_v38 = vadd.f32 %v246_v49, %v138_v62 }
  0xd6   :  { %1113 = vtanh.f32 %v247_v38  ;;  %v254_v38 = vld [vmem:[#allocation3 + $0x18] sm:$0xff] }
  0xdc   :  { %v1114_v42 = vpop.eup %1113 }
  0xdd   :  { %v249_v50 = vsub.f32 %v1579_v43, %v1114_v42  ;;  %v2043_v43 = vld [vmem:[#allocation22_spill] sm:$0xff] }
  0xdf   :  { %v250_v52 = vmul.f32 %v249_v50, %v244_v48 }
  0xe1   :  { %v1726_v56 = vadd.f32 %v1114_v42, %v250_v52 }
  0xe3   :  { %252 = vst [vmem:[#allocation11] sm:$0xff] %v1726_v56  ;;  %273 = vmatmul.f32.vlgmr.msra.gmra.mxu3 %v1726_v56  ;;  %293 = vmatmul.f32.vlgmr.msrb.gmra.mxu0 %v1726_v56 }
  0xe4   :  { %313 = vmatmul.f32.vlgmr.msrb.gmra.mxu1 %v1726_v56  ;;  %521 = vmatpush.msra.mxu3 %v1474_v12 }
  0xe5   :  { %593 = vmatpush.msrb.mxu0 %v1439_v0  ;;  %613 = vmatpush.msrb.mxu1 %v1441_v1 }
  0xe6   :  { %522 = vmatpush.msra.mxu3 %v1479_v13 }
  0xe7   :  { %594 = vmatpush.msrb.mxu0 %v1443_v2  ;;  %614 = vmatpush.msrb.mxu1 %v1447_v3 }
  0xe8   :  { %523 = vmatpush.msra.mxu3 %v1489_v16 }
  0xe9   :  { %595 = vmatpush.msrb.mxu0 %v1449_v4  ;;  %615 = vmatpush.msrb.mxu1 %v1451_v5 }
  0xea   :  { %524 = vmatpush.msra.mxu3 %v1499_v19 }
  0xeb   :  { %596 = vmatpush.msrb.mxu0 %v1456_v6  ;;  %616 = vmatpush.msrb.mxu1 %v1458_v7 }
  0xec   :  { %525 = vmatpush.msra.mxu3 %v1509_v22 }
  0xed   :  { %597 = vmatpush.msrb.mxu0 %v1463_v8  ;;  %617 = vmatpush.msrb.mxu1 %v1465_v9 }
  0xee   :  { %526 = vmatpush.msra.mxu3 %v1519_v25 }
  0xef   :  { %598 = vmatpush.msrb.mxu0 %v1470_v10  ;;  %618 = vmatpush.msrb.mxu1 %v1472_v11 }
  0xf0   :  { %527 = vmatpush.msra.mxu3 %v1529_v28 }
  0xf1   :  { %599 = vmatpush.msrb.mxu0 %v1481_v14  ;;  %619 = vmatpush.msrb.mxu1 %v1483_v15 }
  0xf2   :  { %528 = vmatpush.msra.mxu3 %v1539_v31 }
  0xf3   :  { %600 = vmatpush.msrb.mxu0 %v1491_v17  ;;  %620 = vmatpush.msrb.mxu1 %v1493_v18 }
  0xf4   :  { %529 = vmatpush.msra.mxu3 %v1549_v34 }
  0xf5   :  { %601 = vmatpush.msrb.mxu0 %v1501_v20  ;;  %621 = vmatpush.msrb.mxu1 %v1503_v21 }
  0xf6   :  { %530 = vmatpush.msra.mxu3 %v1559_v37 }
  0xf7   :  { %602 = vmatpush.msrb.mxu0 %v1511_v23  ;;  %622 = vmatpush.msrb.mxu1 %v1513_v24 }
  0xf8   :  { %531 = vmatpush.msra.mxu3 %v1569_v40 }
  0xf9   :  { %603 = vmatpush.msrb.mxu0 %v1521_v26  ;;  %623 = vmatpush.msrb.mxu1 %v1523_v27 }
  0xfa   :  { %532 = vmatpush.msra.mxu3 %v1582_v44 }
  0xfb   :  { %604 = vmatpush.msrb.mxu0 %v1531_v29  ;;  %624 = vmatpush.msrb.mxu1 %v1533_v30 }
  0xfc   :  { %533 = vmatpush.msra.mxu3 %v1589_v45 }
  0xfd   :  { %605 = vmatpush.msrb.mxu0 %v1541_v32  ;;  %625 = vmatpush.msrb.mxu1 %v1543_v33 }
  0xfe   :  { %534 = vmatpush.msra.mxu3 %v1593_v46 }
  0xff   :  { %606 = vmatpush.msrb.mxu0 %v2039_v35  ;;  %626 = vmatpush.msrb.mxu1 %v2040_v36 }
 0x100   :  { %535 = vmatpush.msra.mxu3 %v2041_v39 }
 0x101   :  { %607 = vmatpush.msrb.mxu0 %v2042_v41  ;;  %627 = vmatpush.msrb.mxu1 %v2043_v43 }
 0x102   :  { %536 = vmatpush.msra.mxu3 %v2044_v51 }
 0x103   :  { %608 = vmatpush.msrb.mxu0 %v2045_v57  ;;  %628 = vmatpush.msrb.mxu1 %v2046_v58 }
 0x160   :  { %v294_v60 = vpop.f32.mrf.mxu0 }
 0x161   :  { %v295_v62 = vadd.f32 %v294_v60, %v2047_v61 }
 0x163   :  { %v337_v63 = vadd.f32 %v295_v62, %v255_v59 }
 0x165   :  { %v1082_v49 = vmul.f32 -1.442695, %v337_v63 }
 0x166   :  { %v274_v53 = vpop.f32.mrf.mxu3 }
 0x167   :  { %v275_v54 = vadd.f32 %v274_v53, %v2048_v55  ;;  %1115 = vpow2.f32 %v1082_v49  ;;  %v314_v53 = vpop.f32.mrf.mxu1 }
 0x169   :  { %v317_v42 = vadd.f32 %v275_v54, %v254_v38 }
 0x16b   :  { %v1081_v50 = vmul.f32 -1.442695, %v317_v42  ;;  %v315_v42 = vadd.f32 %v314_v53, %v1722_v47 }
 0x16d   :  { %1117 = vpow2.f32 %v1081_v50  ;;  %v1116_v48 = vpop.eup %1115 }
 0x16e   :  { %v341_v51 = vadd.f32 1.0, %v1116_v48 }
 0x170   :  { %v353_v36 = vand.u32 2147483648, %v341_v51  ;;  %vm347_vm13 = vweird.f32 %v341_v51  ;;  %v351_v35 = vand.u32 2147483647, %v341_v51 }
 0x172   :  { %vm352_vm15 = vcmp.eq.f32.partialorder %v351_v35, 8.507059e+37  ;;  %v2050_v35 = vld [vmem:[#allocation20_spill] sm:$0xff] }
 0x173   :  { %v1118_v52 = vpop.eup %1117 }
 0x174   :  { %v321_v57 = vadd.f32 1.0, %v1118_v52  ;;  %v256_v52 = vld [vmem:[#allocation3 + $0x28] sm:$0xff] }
 0x176   :  { %1119 = vrcp.f32 %v321_v57  ;;  %v333_v62 = vand.u32 2147483648, %v321_v57  ;;  %v331_v61 = vand.u32 2147483647, %v321_v57  ;;  %vm327_vm9 = vweird.f32 %v321_v57 }
 0x177   :  { %1121 = vrcp.f32 %v341_v51 }
 0x178   :  { %v334_v54 = vor.u32 1.1754944e-38, %v333_v62  ;;  %vm332_vm11 = vcmp.eq.f32.partialorder %v331_v61, 8.507059e+37 }
 0x17c   :  { %v1120_v58 = vpop.eup %1119 }
 0x17d   :  { %v1122_v43 = vpop.eup %1121  ;;  %v323_v41 = vmul.f32 %v1120_v58, %v321_v57  ;;  %vm328_vm8 = vweird.f32 %v1120_v58 }
 0x17e   :  { %v343_v59 = vmul.f32 %v1122_v43, %v341_v51  ;;  %vm329_vm10 = vmor %vm327_vm9, %vm328_vm8  ;;  %vm348_vm12 = vweird.f32 %v1122_v43  ;;  %v2054_v51 = vld [vmem:[#allocation26_spill] sm:$0xff] }
 0x17f   :  { %v324_v60 = vsub.f32 1.0, %v323_v41  ;;  %vm349_vm14 = vmor %vm347_vm13, %vm348_vm12 }
 0x180   :  { %v344_v49 = vsub.f32 1.0, %v343_v59 }
 0x181   :  { %v325_v63 = vmul.f32 %v1120_v58, %v324_v60 }
 0x182   :  { %v345_v39 = vmul.f32 %v1122_v43, %v344_v49  ;;  %v366_v49 = vld [vmem:[#allocation3 + $0x30] sm:$0xff] }
 0x183   :  { %v326_v38 = vadd.f32 %v1120_v58, %v325_v63  ;;  %v354_v63 = vor.u32 1.1754944e-38, %v353_v36  ;;  %v2051_v36 = vld [vmem:[#allocation25_spill] sm:$0xff] }
 0x184   :  { %v346_v60 = vadd.f32 %v1122_v43, %v345_v39  ;;  %v2052_v39 = vld [vmem:[#allocation21_spill] sm:$0xff] }
 0x185   :  { %v330_v50 = vsel %vm329_vm10, %v1120_v58, %v326_v38  ;;  %v2056_v38 = vld [vmem:[#allocation24_spill] sm:$0xff] }
 0x186   :  { %v335_v48 = vsel %vm332_vm11, %v334_v54, %v330_v50  ;;  %v350_v57 = vsel %vm349_vm14, %v1122_v43, %v346_v60  ;;  %v2053_v43 = vld [vmem:[#allocation22_spill] sm:$0xff] }
 0x187   :  { %v357_v55 = vmul.f32 %v335_v48, %v315_v42  ;;  %v355_v58 = vsel %vm352_vm15, %v354_v63, %v350_v57  ;;  %v367_v42 = vld [vmem:[#allocation3 + $0x38] sm:$0xff] }
 0x188   :  { %v2057_v48 = vld [vmem:[#allocation27_spill] sm:$0xff] }
 0x189   :  { %v358_v41 = vadd.f32 %v357_v55, %v256_v52  ;;  %v2055_v55 = vld [vmem:[#allocation23_spill] sm:$0xff] }
 0x18b   :  { %1123 = vtanh.f32 %v358_v41  ;;  %v2058_v41 = vld [vmem:[#allocation28_spill] sm:$0xff] }
 0x191   :  { %v1124_v59 = vpop.eup %1123 }
 0x192   :  { %v360_v62 = vsub.f32 %v1726_v56, %v1124_v59  ;;  %v2049_v56 = vld [vmem:[#allocation19_spill] sm:$0xff] }
 0x194   :  { %v361_v61 = vmul.f32 %v360_v62, %v355_v58 }
 0x196   :  { %v1784_v53 = vadd.f32 %v1124_v59, %v361_v61 }
 0x198   :  { %364 = vst [vmem:[#allocation11 + $0x8] sm:$0xff] %v1784_v53  ;;  %385 = vmatmul.f32.vlgmr.msrb.gmra.mxu2 %v1784_v53  ;;  %405 = vmatmul.f32.vlgmr.msrb.gmra.mxu3 %v1784_v53 }
 0x199   :  { %425 = vmatmul.f32.vlgmr.msra.gmra.mxu0 %v1784_v53  ;;  %633 = vmatpush.msrb.mxu2 %v1474_v12 }
 0x19a   :  { %705 = vmatpush.msrb.mxu3 %v1439_v0  ;;  %725 = vmatpush.msra.mxu0 %v1441_v1 }
 0x19b   :  { %634 = vmatpush.msrb.mxu2 %v1479_v13 }
 0x19c   :  { %706 = vmatpush.msrb.mxu3 %v1443_v2  ;;  %726 = vmatpush.msra.mxu0 %v1447_v3 }
 0x19d   :  { %635 = vmatpush.msrb.mxu2 %v1489_v16 }
 0x19e   :  { %707 = vmatpush.msrb.mxu3 %v1449_v4  ;;  %727 = vmatpush.msra.mxu0 %v1451_v5 }
 0x19f   :  { %636 = vmatpush.msrb.mxu2 %v1499_v19 }
 0x1a0   :  { %708 = vmatpush.msrb.mxu3 %v1456_v6  ;;  %728 = vmatpush.msra.mxu0 %v1458_v7 }
 0x1a1   :  { %637 = vmatpush.msrb.mxu2 %v1509_v22 }
 0x1a2   :  { %709 = vmatpush.msrb.mxu3 %v1463_v8  ;;  %729 = vmatpush.msra.mxu0 %v1465_v9 }
 0x1a3   :  { %638 = vmatpush.msrb.mxu2 %v1519_v25 }
 0x1a4   :  { %710 = vmatpush.msrb.mxu3 %v1470_v10  ;;  %730 = vmatpush.msra.mxu0 %v1472_v11 }
 0x1a5   :  { %639 = vmatpush.msrb.mxu2 %v1529_v28 }
 0x1a6   :  { %711 = vmatpush.msrb.mxu3 %v1481_v14  ;;  %731 = vmatpush.msra.mxu0 %v1483_v15 }
 0x1a7   :  { %640 = vmatpush.msrb.mxu2 %v1539_v31 }
 0x1a8   :  { %712 = vmatpush.msrb.mxu3 %v1491_v17  ;;  %732 = vmatpush.msra.mxu0 %v1493_v18 }
 0x1a9   :  { %641 = vmatpush.msrb.mxu2 %v1549_v34 }
 0x1aa   :  { %713 = vmatpush.msrb.mxu3 %v1501_v20  ;;  %733 = vmatpush.msra.mxu0 %v1503_v21 }
 0x1ab   :  { %642 = vmatpush.msrb.mxu2 %v1559_v37 }
 0x1ac   :  { %714 = vmatpush.msrb.mxu3 %v1511_v23  ;;  %734 = vmatpush.msra.mxu0 %v1513_v24 }
 0x1ad   :  { %643 = vmatpush.msrb.mxu2 %v1569_v40 }
 0x1ae   :  { %715 = vmatpush.msrb.mxu3 %v1521_v26  ;;  %735 = vmatpush.msra.mxu0 %v1523_v27 }
 0x1af   :  { %644 = vmatpush.msrb.mxu2 %v1582_v44 }
 0x1b0   :  { %716 = vmatpush.msrb.mxu3 %v1531_v29  ;;  %736 = vmatpush.msra.mxu0 %v1533_v30 }
 0x1b1   :  { %645 = vmatpush.msrb.mxu2 %v1589_v45 }
 0x1b2   :  { %717 = vmatpush.msrb.mxu3 %v1541_v32  ;;  %737 = vmatpush.msra.mxu0 %v1543_v33 }
 0x1b3   :  { %646 = vmatpush.msrb.mxu2 %v1593_v46 }
 0x1b4   :  { %718 = vmatpush.msrb.mxu3 %v2049_v56  ;;  %738 = vmatpush.msra.mxu0 %v2050_v35 }
 0x1b5   :  { %647 = vmatpush.msrb.mxu2 %v2051_v36 }
 0x1b6   :  { %719 = vmatpush.msrb.mxu3 %v2052_v39  ;;  %739 = vmatpush.msra.mxu0 %v2053_v43 }
 0x1b7   :  { %648 = vmatpush.msrb.mxu2 %v2054_v51 }
 0x1b8   :  { %720 = vmatpush.msrb.mxu3 %v2055_v55  ;;  %740 = vmatpush.msra.mxu0 %v2056_v38 }
 0x21b   :  { %v386_v54 = vpop.f32.mrf.mxu2  ;;  %v406_v50 = vpop.f32.mrf.mxu3 }
 0x21c   :  { %v387_v52 = vadd.f32 %v386_v54, %v2057_v48  ;;  %v407_v60 = vadd.f32 %v406_v50, %v2058_v41 }
 0x21e   :  { %v429_v57 = vadd.f32 %v387_v52, %v366_v49  ;;  %v449_v59 = vadd.f32 %v407_v60, %v367_v42  ;;  %v426_v42 = vpop.f32.mrf.mxu0 }
 0x220   :  { %v1083_v63 = vmul.f32 -1.442695, %v429_v57  ;;  %v1084_v62 = vmul.f32 -1.442695, %v449_v59  ;;  %v427_v57 = vadd.f32 %v426_v42, %v1722_v47 }
 0x222   :  { %1125 = vpow2.f32 %v1083_v63 }
 0x223   :  { %1127 = vpow2.f32 %v1084_v62  ;;  %v368_v62 = vld [vmem:[#allocation3 + $0x40] sm:$0xff] }
 0x228   :  { %v1126_v58 = vpop.eup %1125 }
 0x229   :  { %v1128_v61 = vpop.eup %1127  ;;  %v433_v51 = vadd.f32 1.0, %v1126_v58 }
 0x22a   :  { %v453_v55 = vadd.f32 1.0, %v1128_v61 }
 0x22b   :  { %1129 = vrcp.f32 %v433_v51  ;;  %v445_v35 = vand.u32 2147483648, %v433_v51  ;;  %v443_v49 = vand.u32 2147483647, %v433_v51  ;;  %vm439_vm1 = vweird.f32 %v433_v51 }
 0x22c   :  { %1131 = vrcp.f32 %v453_v55  ;;  %v465_v41 = vand.u32 2147483648, %v453_v55  ;;  %vm459_vm5 = vweird.f32 %v453_v55  ;;  %v463_v56 = vand.u32 2147483647, %v453_v55 }
 0x22d   :  { %v446_v52 = vor.u32 1.1754944e-38, %v445_v35  ;;  %vm444_vm3 = vcmp.eq.f32.partialorder %v443_v49, 8.507059e+37 }
 0x22e   :  { %v466_v35 = vor.u32 1.1754944e-38, %v465_v41  ;;  %vm464_vm7 = vcmp.eq.f32.partialorder %v463_v56, 8.507059e+37 }
 0x231   :  { %v1130_v38 = vpop.eup %1129 }
 0x232   :  { %v1132_v43 = vpop.eup %1131  ;;  %v435_v39 = vmul.f32 %v1130_v38, %v433_v51  ;;  %vm440_vm0 = vweird.f32 %v1130_v38 }
 0x233   :  { %v455_v54 = vmul.f32 %v1132_v43, %v453_v55  ;;  %vm441_vm2 = vmor %vm439_vm1, %vm440_vm0  ;;  %vm460_vm4 = vweird.f32 %v1132_v43 }
 0x234   :  { %v436_v36 = vsub.f32 1.0, %v435_v39  ;;  %vm461_vm6 = vmor %vm459_vm5, %vm460_vm4 }
 0x235   :  { %v456_v60 = vsub.f32 1.0, %v455_v54 }
 0x236   :  { %v437_v48 = vmul.f32 %v1130_v38, %v436_v36 }
 0x237   :  { %v457_v61 = vmul.f32 %v1132_v43, %v456_v60 }
 0x238   :  { %v438_v50 = vadd.f32 %v1130_v38, %v437_v48 }
 0x239   :  { %v458_v36 = vadd.f32 %v1132_v43, %v457_v61  ;;  %v1906_v61 = vld [vmem:[#allocation8 + $0x178] sm:$0xff] }
 0x23a   :  { %v442_v59 = vsel %vm441_vm2, %v1130_v38, %v438_v50 }
 0x23b   :  { %v447_v63 = vsel %vm444_vm3, %v446_v52, %v442_v59  ;;  %v462_v51 = vsel %vm461_vm6, %v1132_v43, %v458_v36  ;;  %v1187_v36 = vld [vmem:[#allocation8 + $0x170] sm:$0xff] }
 0x23c   :  { %v469_v58 = vmul.f32 %v447_v63, %v427_v57  ;;  %v467_v38 = vsel %vm464_vm7, %v466_v35, %v462_v51  ;;  %v1909_v51 = vld [vmem:[#allocation8 + $0x160] sm:$0xff]  ;;  %v1190_v35 = vld [vmem:[#allocation8 + $0x158] sm:$0xff] }
 0x23e   :  { %v470_v39 = vadd.f32 %v469_v58, %v368_v62 }
 0x240   :  { %1133 = vtanh.f32 %v470_v39  ;;  %v1186_v39 = vld [vmem:[#allocation8 + $0x168] sm:$0xff] }
 0x246   :  { %v1134_v48 = vpop.eup %1133 }
 0x247   :  { %v472_v54 = vsub.f32 %v1784_v53, %v1134_v48 }
 0x249   :  { %v473_v49 = vmul.f32 %v472_v54, %v467_v38  ;;  %v1912_v54 = vld [vmem:[#allocation8 + $0x148] sm:$0xff]  ;;  %v1192_v38 = vld [vmem:[#allocation8 + $0x138] sm:$0xff] }
 0x24b   :  { %v1842_v42 = vadd.f32 %v1134_v48, %v473_v49  ;;  %v1189_v48 = vld [vmem:[#allocation8 + $0x150] sm:$0xff]  ;;  %v1193_v49 = vld [vmem:[#allocation8 + $0x140] sm:$0xff] }
 0x24d   :  { %476 = vst [vmem:[#allocation11 + $0x10] sm:$0xff] %v1842_v42  ;;  %497 = vmatmul.f32.vlgmr.msra.gmra.mxu1 %v1842_v42  ;;  %517 = vmatmul.f32.vlgmr.msra.gmra.mxu2 %v1842_v42 }
 0x24e   :  { %537 = vmatmul.f32.vlgmr.msra.gmra.mxu3 %v1842_v42  ;;  %745 = vmatpush.msra.mxu1 %v1474_v12 }
 0x24f   :  { %817 = vmatpush.msra.mxu2 %v1439_v0  ;;  %837 = vmatpush.msra.mxu3 %v1441_v1  ;;  %v2059_v0 = vld [vmem:[#allocation19_spill] sm:$0xff]  ;;  %v2060_v1 = vld [vmem:[#allocation20_spill] sm:$0xff] }
 0x250   :  { %746 = vmatpush.msra.mxu1 %v1479_v13 }
 0x251   :  { %818 = vmatpush.msra.mxu2 %v1443_v2  ;;  %838 = vmatpush.msra.mxu3 %v1447_v3  ;;  %v2061_v2 = vld [vmem:[#allocation25_spill] sm:$0xff] }
 0x252   :  { %747 = vmatpush.msra.mxu1 %v1489_v16  ;;  %v2062_v3 = vld [vmem:[#allocation21_spill] sm:$0xff]  ;;  %v2068_v16 = vld [vmem:[#allocation28_spill] sm:$0xff] }
 0x253   :  { %819 = vmatpush.msra.mxu2 %v1449_v4  ;;  %839 = vmatpush.msra.mxu3 %v1451_v5  ;;  %v2063_v4 = vld [vmem:[#allocation22_spill] sm:$0xff] }
 0x254   :  { %748 = vmatpush.msra.mxu1 %v1499_v19  ;;  %v2064_v5 = vld [vmem:[#allocation26_spill] sm:$0xff] }
 0x255   :  { %820 = vmatpush.msra.mxu2 %v1456_v6  ;;  %840 = vmatpush.msra.mxu3 %v1458_v7  ;;  %v2065_v6 = vld [vmem:[#allocation23_spill] sm:$0xff]  ;;  %v2066_v7 = vld [vmem:[#allocation24_spill] sm:$0xff] }
 0x256   :  { %749 = vmatpush.msra.mxu1 %v1509_v22 }
 0x257   :  { %821 = vmatpush.msra.mxu2 %v1463_v8  ;;  %841 = vmatpush.msra.mxu3 %v1465_v9  ;;  %v478_v8 = vld [vmem:[#allocation3 + $0x48] sm:$0xff] }
 0x258   :  { %750 = vmatpush.msra.mxu1 %v1519_v25 }
 0x259   :  { %822 = vmatpush.msra.mxu2 %v1470_v10  ;;  %842 = vmatpush.msra.mxu3 %v1472_v11  ;;  %v2067_v10 = vld [vmem:[#allocation27_spill] sm:$0xff] }
 0x25a   :  { %751 = vmatpush.msra.mxu1 %v1529_v28 }
 0x25b   :  { %823 = vmatpush.msra.mxu2 %v1481_v14  ;;  %843 = vmatpush.msra.mxu3 %v1483_v15  ;;  %v479_v14 = vld [vmem:[#allocation3 + $0x50] sm:$0xff] }
 0x25c   :  { %752 = vmatpush.msra.mxu1 %v1539_v31 }
 0x25d   :  { %824 = vmatpush.msra.mxu2 %v1491_v17  ;;  %844 = vmatpush.msra.mxu3 %v1493_v18 }
 0x25e   :  { %753 = vmatpush.msra.mxu1 %v1549_v34 }
 0x25f   :  { %825 = vmatpush.msra.mxu2 %v1501_v20  ;;  %845 = vmatpush.msra.mxu3 %v1503_v21 }
 0x260   :  { %754 = vmatpush.msra.mxu1 %v1559_v37 }
 0x261   :  { %826 = vmatpush.msra.mxu2 %v1511_v23  ;;  %846 = vmatpush.msra.mxu3 %v1513_v24 }
 0x262   :  { %755 = vmatpush.msra.mxu1 %v1569_v40 }
 0x263   :  { %827 = vmatpush.msra.mxu2 %v1521_v26  ;;  %847 = vmatpush.msra.mxu3 %v1523_v27 }
 0x264   :  { %756 = vmatpush.msra.mxu1 %v1582_v44 }
 0x265   :  { %828 = vmatpush.msra.mxu2 %v1531_v29  ;;  %848 = vmatpush.msra.mxu3 %v1533_v30 }
 0x266   :  { %757 = vmatpush.msra.mxu1 %v1589_v45  ;;  %v480_v45 = vld [vmem:[#allocation3 + $0x58] sm:$0xff] }
 0x267   :  { %829 = vmatpush.msra.mxu2 %v1541_v32  ;;  %849 = vmatpush.msra.mxu3 %v1543_v33 }
 0x268   :  { %758 = vmatpush.msra.mxu1 %v1593_v46 }
 0x269   :  { %830 = vmatpush.msra.mxu2 %v2059_v0  ;;  %850 = vmatpush.msra.mxu3 %v2060_v1  ;;  %v1195_v0 = vld [vmem:[#allocation8 + $0x120] sm:$0xff]  ;;  %v1196_v1 = vld [vmem:[#allocation8 + $0x128] sm:$0xff] }
 0x26a   :  { %759 = vmatpush.msra.mxu1 %v2061_v2  ;;  %v1918_v2 = vld [vmem:[#allocation8 + $0x118] sm:$0xff] }
 0x26b   :  { %831 = vmatpush.msra.mxu2 %v2062_v3  ;;  %851 = vmatpush.msra.mxu3 %v2063_v4  ;;  %v1198_v3 = vld [vmem:[#allocation8 + $0x108] sm:$0xff]  ;;  %v1199_v4 = vld [vmem:[#allocation8 + $0x110] sm:$0xff] }
 0x26c   :  { %760 = vmatpush.msra.mxu1 %v2064_v5  ;;  %v1921_v5 = vld [vmem:[#allocation8 + $0x100] sm:$0xff] }
 0x26d   :  { %832 = vmatpush.msra.mxu2 %v2065_v6  ;;  %852 = vmatpush.msra.mxu3 %v2066_v7  ;;  %v1201_v6 = vld [vmem:[#allocation8 + $0xf0] sm:$0xff]  ;;  %v1202_v7 = vld [vmem:[#allocation8 + $0xf8] sm:$0xff] }
 0x2ca   :  { %v498_v9 = vpop.f32.mrf.mxu1 }
 0x2cb   :  { %v499_v11 = vadd.f32 %v498_v9, %v2067_v10  ;;  %v1204_v9 = vld [vmem:[#allocation8 + $0xd8] sm:$0xff] }
 0x2cd   :  { %v541_v12 = vadd.f32 %v499_v11, %v478_v8  ;;  %v1924_v8 = vld [vmem:[#allocation8 + $0xe8] sm:$0xff]  ;;  %v1205_v11 = vld [vmem:[#allocation8 + $0xe0] sm:$0xff] }
 0x2cf   :  { %v1085_v13 = vmul.f32 -1.442695, %v541_v12  ;;  %v1927_v12 = vld [vmem:[#allocation8 + $0xd0] sm:$0xff] }
 0x2d0   :  { %v518_v15 = vpop.f32.mrf.mxu2 }
 0x2d1   :  { %1135 = vpow2.f32 %v1085_v13  ;;  %v519_v17 = vadd.f32 %v518_v15, %v2068_v16  ;;  %v538_v31 = vpop.f32.mrf.mxu3  ;;  %v1207_v13 = vld [vmem:[#allocation8 + $0xc0] sm:$0xff]  ;;  %v1930_v15 = vld [vmem:[#allocation8 + $0xb8] sm:$0xff] }
 0x2d2   :  { %v539_v40 = vadd.f32 %v538_v31, %v1722_v47  ;;  %v1945_v31 = vld [vmem:[#allocation8 + $0x40] sm:$0xff] }
 0x2d3   :  { %v561_v18 = vadd.f32 %v519_v17, %v479_v14  ;;  %v1208_v14 = vld [vmem:[#allocation8 + $0xc8] sm:$0xff] }
 0x2d4   :  { %v1210_v17 = vld [vmem:[#allocation8 + $0xa8] sm:$0xff] }
 0x2d5   :  { %v1086_v19 = vmul.f32 -1.442695, %v561_v18  ;;  %v1211_v18 = vld [vmem:[#allocation8 + $0xb0] sm:$0xff] }
 0x2d7   :  { %v1136_v20 = vpop.eup %1135  ;;  %1137 = vpow2.f32 %v1086_v19  ;;  %v1933_v19 = vld [vmem:[#allocation8 + $0xa0] sm:$0xff] }
 0x2d8   :  { %v545_v21 = vadd.f32 1.0, %v1136_v20  ;;  %v1213_v20 = vld [vmem:[#allocation8 + $0x90] sm:$0xff] }
 0x2da   :  { %1139 = vrcp.f32 %v545_v21  ;;  %v557_v27 = vand.u32 2147483648, %v545_v21  ;;  %v555_v29 = vand.u32 2147483647, %v545_v21  ;;  %vm551_vm9 = vweird.f32 %v545_v21 }
 0x2dc   :  { %v558_v34 = vor.u32 1.1754944e-38, %v557_v27  ;;  %vm556_vm11 = vcmp.eq.f32.partialorder %v555_v29, 8.507059e+37  ;;  %v1220_v27 = vld [vmem:[#allocation8 + $0x68] sm:$0xff] }
 0x2dd   :  { %v1138_v22 = vpop.eup %1137  ;;  %v1222_v29 = vld [vmem:[#allocation8 + $0x48] sm:$0xff] }
 0x2de   :  { %v565_v23 = vadd.f32 1.0, %v1138_v22  ;;  %v1936_v22 = vld [vmem:[#allocation8 + $0x88] sm:$0xff] }
 0x2e0   :  { %v1140_v24 = vpop.eup %1139  ;;  %1141 = vrcp.f32 %v565_v23  ;;  %v577_v41 = vand.u32 2147483648, %v565_v23  ;;  %vm571_vm13 = vweird.f32 %v565_v23  ;;  %v575_v50 = vand.u32 2147483647, %v565_v23 }
 0x2e1   :  { %v547_v25 = vmul.f32 %v1140_v24, %v545_v21  ;;  %vm552_vm8 = vweird.f32 %v1140_v24  ;;  %v1214_v21 = vld [vmem:[#allocation8 + $0x98] sm:$0xff] }
 0x2e2   :  { %vm553_vm10 = vmor %vm551_vm9, %vm552_vm8  ;;  %v578_v57 = vor.u32 1.1754944e-38, %v577_v41  ;;  %vm576_vm15 = vcmp.eq.f32.partialorder %v575_v50, 8.507059e+37 }
 0x2e3   :  { %v548_v26 = vsub.f32 1.0, %v547_v25  ;;  %v1939_v25 = vld [vmem:[#allocation8 + $0x70] sm:$0xff] }
 0x2e5   :  { %v549_v28 = vmul.f32 %v1140_v24, %v548_v26  ;;  %v1219_v26 = vld [vmem:[#allocation8 + $0x60] sm:$0xff] }
 0x2e6   :  { %v1142_v30 = vpop.eup %1141 }
 0x2e7   :  { %v567_v32 = vmul.f32 %v1142_v30, %v565_v23  ;;  %v550_v33 = vadd.f32 %v1140_v24, %v549_v28  ;;  %vm572_vm12 = vweird.f32 %v1142_v30  ;;  %v1216_v23 = vld [vmem:[#allocation8 + $0x78] sm:$0xff] }
 0x2e8   :  { %vm573_vm14 = vmor %vm571_vm13, %vm572_vm12  ;;  %v1942_v28 = vld [vmem:[#allocation8 + $0x58] sm:$0xff] }
 0x2e9   :  { %v568_v37 = vsub.f32 1.0, %v567_v32  ;;  %v554_v44 = vsel %vm553_vm10, %v1140_v24, %v550_v33  ;;  %v1217_v24 = vld [vmem:[#allocation8 + $0x80] sm:$0xff]  ;;  %v1225_v32 = vld [vmem:[#allocation8 + $0x30] sm:$0xff]  ;;  %v1226_v33 = vld [vmem:[#allocation8 + $0x38] sm:$0xff] }
 0x2ea   :  { %v559_v46 = vsel %vm556_vm11, %v558_v34, %v554_v44  ;;  %v1948_v34 = vld [vmem:[#allocation8 + $0x28] sm:$0xff]  ;;  %v1951_v44 = vld [vmem:[#allocation8 + $0x10] sm:$0xff] }
 0x2eb   :  { %v581_v53 = vmul.f32 %v559_v46, %v539_v40  ;;  %v569_v56 = vmul.f32 %v1142_v30, %v568_v37  ;;  %v1228_v37 = vld [vmem:[#allocation8 + $0x18] sm:$0xff]  ;;  %v1229_v40 = vld [vmem:[#allocation8 + $0x20] sm:$0xff]  ;;  %v1232_v46 = vld [vmem:[#allocation8 + $0x8] sm:$0xff] }
 0x2ed   :  { %v582_v43 = vadd.f32 %v581_v53, %v480_v45  ;;  %v570_v55 = vadd.f32 %v1142_v30, %v569_v56  ;;  %v1231_v45 = vld [vmem:[#allocation8] sm:$0xff]  ;;  %v590_v53 = vld [vmem:[#allocation3 + $0x60] sm:$0xff] }
 0x2ef   :  { %1143 = vtanh.f32 %v582_v43  ;;  %v574_v52 = vsel %vm573_vm14, %v1142_v30, %v570_v55  ;;  %v1223_v30 = vld [vmem:[#allocation8 + $0x50] sm:$0xff]  ;;  %v591_v43 = vld [vmem:[#allocation3 + $0x68] sm:$0xff] }
 0x2f0   :  { %v579_v63 = vsel %vm576_vm15, %v578_v57, %v574_v52 }
 0x2f5   :  { %v1144_v60 = vpop.eup %1143 }
 0x2f6   :  { %v584_v59 = vsub.f32 %v1842_v42, %v1144_v60  ;;  %v1915_v42 = vld [vmem:[#allocation8 + $0x130] sm:$0xff] }
 0x2f8   :  { %v585_v62 = vmul.f32 %v584_v59, %v579_v63 }
 0x2fa   :  { %v1900_v58 = vadd.f32 %v1144_v60, %v585_v62 }
 0x2fc   :  { %588 = vst [vmem:[#allocation11 + $0x18] sm:$0xff] %v1900_v58  ;;  %609 = vmatmul.f32.vlgmr.msrb.gmra.mxu0 %v1900_v58  ;;  %629 = vmatmul.f32.vlgmr.msrb.gmra.mxu1 %v1900_v58 }
 0x2fd   :  { %649 = vmatmul.f32.vlgmr.msrb.gmra.mxu2 %v1900_v58  ;;  %857 = vmatpush.msrb.mxu0 %v1906_v61 }
 0x2fe   :  { %929 = vmatpush.msrb.mxu1 %v1186_v39  ;;  %949 = vmatpush.msrb.mxu2 %v1187_v36 }
 0x2ff   :  { %858 = vmatpush.msrb.mxu0 %v1909_v51 }
 0x300   :  { %930 = vmatpush.msrb.mxu1 %v1189_v48  ;;  %950 = vmatpush.msrb.mxu2 %v1190_v35 }
 0x301   :  { %859 = vmatpush.msrb.mxu0 %v1912_v54 }
 0x302   :  { %931 = vmatpush.msrb.mxu1 %v1192_v38  ;;  %951 = vmatpush.msrb.mxu2 %v1193_v49 }
 0x303   :  { %860 = vmatpush.msrb.mxu0 %v1915_v42 }
 0x304   :  { %932 = vmatpush.msrb.mxu1 %v1195_v0  ;;  %952 = vmatpush.msrb.mxu2 %v1196_v1 }
 0x305   :  { %861 = vmatpush.msrb.mxu0 %v1918_v2 }
 0x306   :  { %933 = vmatpush.msrb.mxu1 %v1198_v3  ;;  %953 = vmatpush.msrb.mxu2 %v1199_v4 }
 0x307   :  { %862 = vmatpush.msrb.mxu0 %v1921_v5 }
 0x308   :  { %934 = vmatpush.msrb.mxu1 %v1201_v6  ;;  %954 = vmatpush.msrb.mxu2 %v1202_v7 }
 0x309   :  { %863 = vmatpush.msrb.mxu0 %v1924_v8 }
 0x30a   :  { %935 = vmatpush.msrb.mxu1 %v1204_v9  ;;  %955 = vmatpush.msrb.mxu2 %v1205_v11 }
 0x30b   :  { %864 = vmatpush.msrb.mxu0 %v1927_v12 }
 0x30c   :  { %936 = vmatpush.msrb.mxu1 %v1207_v13  ;;  %956 = vmatpush.msrb.mxu2 %v1208_v14 }
 0x30d   :  { %865 = vmatpush.msrb.mxu0 %v1930_v15 }
 0x30e   :  { %937 = vmatpush.msrb.mxu1 %v1210_v17  ;;  %957 = vmatpush.msrb.mxu2 %v1211_v18  ;;  %v592_v17 = vld [vmem:[#allocation3 + $0x70] sm:$0xff] }
 0x30f   :  { %866 = vmatpush.msrb.mxu0 %v1933_v19 }
 0x310   :  { %938 = vmatpush.msrb.mxu1 %v1213_v20  ;;  %958 = vmatpush.msrb.mxu2 %v1214_v21 }
 0x311   :  { %867 = vmatpush.msrb.mxu0 %v1936_v22 }
 0x312   :  { %939 = vmatpush.msrb.mxu1 %v1216_v23  ;;  %959 = vmatpush.msrb.mxu2 %v1217_v24 }
 0x313   :  { %868 = vmatpush.msrb.mxu0 %v1939_v25 }
 0x314   :  { %940 = vmatpush.msrb.mxu1 %v1219_v26  ;;  %960 = vmatpush.msrb.mxu2 %v1220_v27 }
 0x315   :  { %869 = vmatpush.msrb.mxu0 %v1942_v28 }
 0x316   :  { %941 = vmatpush.msrb.mxu1 %v1222_v29  ;;  %961 = vmatpush.msrb.mxu2 %v1223_v30 }
 0x317   :  { %870 = vmatpush.msrb.mxu0 %v1945_v31 }
 0x318   :  { %942 = vmatpush.msrb.mxu1 %v1225_v32  ;;  %962 = vmatpush.msrb.mxu2 %v1226_v33 }
 0x319   :  { %871 = vmatpush.msrb.mxu0 %v1948_v34 }
 0x31a   :  { %943 = vmatpush.msrb.mxu1 %v1228_v37  ;;  %963 = vmatpush.msrb.mxu2 %v1229_v40 }
 0x31b   :  { %872 = vmatpush.msrb.mxu0 %v1951_v44 }
 0x31c   :  { %944 = vmatpush.msrb.mxu1 %v1231_v45  ;;  %964 = vmatpush.msrb.mxu2 %v1232_v46 }
 0x379   :  { %v610_v56 = vpop.f32.mrf.mxu0  ;;  %v630_v55 = vpop.f32.mrf.mxu1 }
 0x37a   :  { %v611_v41 = vadd.f32 %v610_v56, %v2067_v10  ;;  %v631_v50 = vadd.f32 %v630_v55, %v2068_v16 }
 0x37c   :  { %v653_v52 = vadd.f32 %v611_v41, %v590_v53  ;;  %v673_v60 = vadd.f32 %v631_v50, %v591_v43 }
 0x37e   :  { %v1087_v57 = vmul.f32 -1.442695, %v653_v52  ;;  %v1088_v59 = vmul.f32 -1.442695, %v673_v60 }
 0x380   :  { %1145 = vpow2.f32 %v1087_v57  ;;  %v650_v6 = vpop.f32.mrf.mxu2 }
 0x381   :  { %1147 = vpow2.f32 %v1088_v59  ;;  %v651_v13 = vadd.f32 %v650_v6, %v1722_v47 }
 0x386   :  { %v1146_v63 = vpop.eup %1145 }
 0x387   :  { %v1148_v62 = vpop.eup %1147  ;;  %v657_v39 = vadd.f32 1.0, %v1146_v63 }
 0x388   :  { %v677_v36 = vadd.f32 1.0, %v1148_v62  ;;  %v704_v62 = vld [vmem:[#allocation3 + $0x88] sm:$0xff] }
 0x389   :  { %1149 = vrcp.f32 %v657_v39  ;;  %v669_v1 = vand.u32 2147483648, %v657_v39  ;;  %v667_v4 = vand.u32 2147483647, %v657_v39  ;;  %vm663_vm1 = vweird.f32 %v657_v39 }
 0x38a   :  { %1151 = vrcp.f32 %v677_v36  ;;  %v689_v26 = vand.u32 2147483648, %v677_v36  ;;  %vm683_vm5 = vweird.f32 %v677_v36  ;;  %v687_v27 = vand.u32 2147483647, %v677_v36 }
 0x38b   :  { %v670_v11 = vor.u32 1.1754944e-38, %v669_v1  ;;  %vm668_vm3 = vcmp.eq.f32.partialorder %v667_v4, 8.507059e+37 }
 0x38c   :  { %v690_v32 = vor.u32 1.1754944e-38, %v689_v26  ;;  %vm688_vm7 = vcmp.eq.f32.partialorder %v687_v27, 8.507059e+37 }
 0x38f   :  { %v1150_v48 = vpop.eup %1149 }
 0x390   :  { %v1152_v35 = vpop.eup %1151  ;;  %v659_v38 = vmul.f32 %v1150_v48, %v657_v39  ;;  %vm664_vm0 = vweird.f32 %v1150_v48 }
 0x391   :  { %v679_v0 = vmul.f32 %v1152_v35, %v677_v36  ;;  %vm665_vm2 = vmor %vm663_vm1, %vm664_vm0  ;;  %vm684_vm4 = vweird.f32 %v1152_v35 }
 0x392   :  { %v660_v49 = vsub.f32 1.0, %v659_v38  ;;  %vm685_vm6 = vmor %vm683_vm5, %vm684_vm4 }
 0x393   :  { %v680_v9 = vsub.f32 1.0, %v679_v0 }
 0x394   :  { %v661_v3 = vmul.f32 %v1150_v48, %v660_v49 }
 0x395   :  { %v681_v21 = vmul.f32 %v1152_v35, %v680_v9 }
 0x396   :  { %v662_v7 = vadd.f32 %v1150_v48, %v661_v3 }
 0x397   :  { %v682_v24 = vadd.f32 %v1152_v35, %v681_v21 }
 0x398   :  { %v666_v14 = vsel %vm665_vm2, %v1150_v48, %v662_v7 }
 0x399   :  { %v671_v18 = vsel %vm668_vm3, %v670_v11, %v666_v14  ;;  %v686_v29 = vsel %vm685_vm6, %v1152_v35, %v682_v24  ;;  %v814_v11 = vld [vmem:[#allocation3 + $0x90] sm:$0xff]  ;;  %v815_v14 = vld [vmem:[#allocation3 + $0x98] sm:$0xff] }
 0x39a   :  { %v693_v20 = vmul.f32 %v671_v18, %v651_v13  ;;  %v691_v37 = vsel %vm688_vm7, %v690_v32, %v686_v29 }
 0x39c   :  { %v694_v23 = vadd.f32 %v693_v20, %v592_v17 }
 0x39e   :  { %1153 = vtanh.f32 %v694_v23 }
 0x3a4   :  { %v1154_v30 = vpop.eup %1153 }
 0x3a5   :  { %v696_v33 = vsub.f32 %v1900_v58, %v1154_v30  ;;  %v703_v58 = vld [vmem:[#allocation3 + $0x80] sm:$0xff] }
 0x3a7   :  { %v697_v40 = vmul.f32 %v696_v33, %v691_v37 }
 0x3a9   :  { %v1958_v45 = vadd.f32 %v1154_v30, %v697_v40 }
 0x3ab   :  { %700 = vst [vmem:[#allocation11 + $0x20] sm:$0xff] %v1958_v45  ;;  %721 = vmatmul.f32.vlgmr.msrb.gmra.mxu3 %v1958_v45  ;;  %741 = vmatmul.f32.vlgmr.msra.gmra.mxu0 %v1958_v45 }
 0x3ac   :  { %761 = vmatmul.f32.vlgmr.msra.gmra.mxu1 %v1958_v45  ;;  %969 = vmatpush.msrb.mxu3 %v1906_v61 }
 0x3ae   :  { %970 = vmatpush.msrb.mxu3 %v1909_v51 }
 0x3b0   :  { %971 = vmatpush.msrb.mxu3 %v1912_v54 }
 0x3b2   :  { %972 = vmatpush.msrb.mxu3 %v1915_v42 }
 0x3b4   :  { %973 = vmatpush.msrb.mxu3 %v1918_v2  ;;  %v702_v2 = vld [vmem:[#allocation3 + $0x78] sm:$0xff] }
 0x3b6   :  { %974 = vmatpush.msrb.mxu3 %v1921_v5 }
 0x3b8   :  { %975 = vmatpush.msrb.mxu3 %v1924_v8 }
 0x3ba   :  { %976 = vmatpush.msrb.mxu3 %v1927_v12 }
 0x3bc   :  { %977 = vmatpush.msrb.mxu3 %v1930_v15 }
 0x3be   :  { %978 = vmatpush.msrb.mxu3 %v1933_v19 }
 0x3c0   :  { %979 = vmatpush.msrb.mxu3 %v1936_v22 }
 0x3c2   :  { %980 = vmatpush.msrb.mxu3 %v1939_v25 }
 0x3c4   :  { %981 = vmatpush.msrb.mxu3 %v1942_v28 }
 0x3c6   :  { %982 = vmatpush.msrb.mxu3 %v1945_v31 }
 0x3c8   :  { %983 = vmatpush.msrb.mxu3 %v1948_v34 }
 0x3ca   :  { %984 = vmatpush.msrb.mxu3 %v1951_v44 }
 0x428   :  { %v742_v61 = vpop.f32.mrf.mxu0 }
 0x429   :  { %v743_v51 = vadd.f32 %v742_v61, %v2068_v16  ;;  %v762_v41 = vpop.f32.mrf.mxu1 }
 0x42a   :  { %v763_v57 = vadd.f32 %v762_v41, %v1722_v47 }
 0x42b   :  { %v785_v54 = vadd.f32 %v743_v51, %v703_v58 }
 0x42d   :  { %v1090_v42 = vmul.f32 -1.442695, %v785_v54 }
 0x42e   :  { %v722_v5 = vpop.f32.mrf.mxu3 }
 0x42f   :  { %v723_v8 = vadd.f32 %v722_v5, %v2067_v10  ;;  %1155 = vpow2.f32 %v1090_v42 }
 0x431   :  { %v765_v12 = vadd.f32 %v723_v8, %v702_v2 }
 0x433   :  { %v1089_v15 = vmul.f32 -1.442695, %v765_v12 }
 0x435   :  { %1157 = vpow2.f32 %v1089_v15  ;;  %v1156_v19 = vpop.eup %1155 }
 0x436   :  { %v789_v25 = vadd.f32 1.0, %v1156_v19 }
 0x438   :  { %v801_v38 = vand.u32 2147483648, %v789_v25  ;;  %vm795_vm13 = vweird.f32 %v789_v25  ;;  %v799_v49 = vand.u32 2147483647, %v789_v25 }
 0x43a   :  { %v802_v3 = vor.u32 1.1754944e-38, %v801_v38  ;;  %vm800_vm15 = vcmp.eq.f32.partialorder %v799_v49, 8.507059e+37 }
 0x43b   :  { %v1158_v22 = vpop.eup %1157 }
 0x43c   :  { %v769_v28 = vadd.f32 1.0, %v1158_v22  ;;  %v816_v22 = vld [vmem:[#allocation3 + $0xa0] sm:$0xff] }
 0x43e   :  { %1159 = vrcp.f32 %v769_v28  ;;  %v781_v56 = vand.u32 2147483648, %v769_v28  ;;  %v779_v55 = vand.u32 2147483647, %v769_v28  ;;  %vm775_vm9 = vweird.f32 %v769_v28 }
 0x43f   :  { %1161 = vrcp.f32 %v789_v25 }
 0x440   :  { %v782_v60 = vor.u32 1.1754944e-38, %v781_v56  ;;  %vm780_vm11 = vcmp.eq.f32.partialorder %v779_v55, 8.507059e+37 }
 0x444   :  { %v1160_v31 = vpop.eup %1159 }
 0x445   :  { %v1162_v34 = vpop.eup %1161  ;;  %v771_v44 = vmul.f32 %v1160_v31, %v769_v28  ;;  %vm776_vm8 = vweird.f32 %v1160_v31 }
 0x446   :  { %v791_v53 = vmul.f32 %v1162_v34, %v789_v25  ;;  %vm777_vm10 = vmor %vm775_vm9, %vm776_vm8  ;;  %vm796_vm12 = vweird.f32 %v1162_v34 }
 0x447   :  { %v772_v46 = vsub.f32 1.0, %v771_v44  ;;  %vm797_vm14 = vmor %vm795_vm13, %vm796_vm12 }
 0x448   :  { %v792_v52 = vsub.f32 1.0, %v791_v53 }
 0x449   :  { %v773_v43 = vmul.f32 %v1160_v31, %v772_v46 }
 0x44a   :  { %v793_v36 = vmul.f32 %v1162_v34, %v792_v52 }
 0x44b   :  { %v774_v50 = vadd.f32 %v1160_v31, %v773_v43 }
 0x44c   :  { %v794_v35 = vadd.f32 %v1162_v34, %v793_v36 }
 0x44d   :  { %v778_v59 = vsel %vm777_vm10, %v1160_v31, %v774_v50 }
 0x44e   :  { %v783_v63 = vsel %vm780_vm11, %v782_v60, %v778_v59  ;;  %v798_v0 = vsel %vm797_vm14, %v1162_v34, %v794_v35  ;;  %v926_v60 = vld [vmem:[#allocation3 + $0xa8] sm:$0xff] }
 0x44f   :  { %v805_v39 = vmul.f32 %v783_v63, %v763_v57  ;;  %v803_v6 = vsel %vm800_vm15, %v802_v3, %v798_v0 }
 0x451   :  { %v806_v48 = vadd.f32 %v805_v39, %v704_v62  ;;  %v927_v39 = vld [vmem:[#allocation3 + $0xb0] sm:$0xff] }
 0x453   :  { %1163 = vtanh.f32 %v806_v48 }
 0x459   :  { %v1164_v1 = vpop.eup %1163 }
 0x45a   :  { %v808_v4 = vsub.f32 %v1958_v45, %v1164_v1 }
 0x45c   :  { %v809_v7 = vmul.f32 %v808_v4, %v803_v6 }
 0x45e   :  { %v810_v9 = vadd.f32 %v1164_v1, %v809_v7 }
 0x460   :  { %812 = vst [vmem:[#allocation11 + $0x28] sm:$0xff] %v810_v9  ;;  %833 = vmatmul.f32.vlgmr.msra.gmra.mxu2 %v810_v9  ;;  %853 = vmatmul.f32.vlgmr.msra.gmra.mxu3 %v810_v9 }
 0x461   :  { %873 = vmatmul.f32.vlgmr.msrb.gmra.mxu0 %v810_v9 }
 0x4de   :  { %v874_v42 = vpop.f32.mrf.mxu0 }
 0x4df   :  { %v875_v12 = vadd.f32 %v874_v42, %v1722_v47 }
 0x4e3   :  { %v834_v13 = vpop.f32.mrf.mxu2  ;;  %v854_v17 = vpop.f32.mrf.mxu3 }
 0x4e4   :  { %v835_v18 = vadd.f32 %v834_v13, %v2067_v10  ;;  %v855_v20 = vadd.f32 %v854_v17, %v2068_v16 }
 0x4e6   :  { %v877_v21 = vadd.f32 %v835_v18, %v814_v11  ;;  %v897_v23 = vadd.f32 %v855_v20, %v815_v14 }
 0x4e8   :  { %v1091_v24 = vmul.f32 -1.442695, %v877_v21  ;;  %v1092_v26 = vmul.f32 -1.442695, %v897_v23 }
 0x4ea   :  { %1165 = vpow2.f32 %v1091_v24  ;;  %v928_v24 = vld [vmem:[#allocation3 + $0xb8] sm:$0xff] }
 0x4eb   :  { %1167 = vpow2.f32 %v1092_v26 }
 0x4f0   :  { %v1166_v27 = vpop.eup %1165 }
 0x4f1   :  { %v1168_v29 = vpop.eup %1167  ;;  %v881_v30 = vadd.f32 1.0, %v1166_v27 }
 0x4f2   :  { %v901_v32 = vadd.f32 1.0, %v1168_v29 }
 0x4f3   :  { %1169 = vrcp.f32 %v881_v30  ;;  %v893_v58 = vand.u32 2147483648, %v881_v30  ;;  %v891_v54 = vand.u32 2147483647, %v881_v30  ;;  %vm887_vm1 = vweird.f32 %v881_v30 }
 0x4f4   :  { %1171 = vrcp.f32 %v901_v32  ;;  %v913_v44 = vand.u32 2147483648, %v901_v32  ;;  %vm907_vm5 = vweird.f32 %v901_v32  ;;  %v911_v46 = vand.u32 2147483647, %v901_v32 }
 0x4f5   :  { %v894_v5 = vor.u32 1.1754944e-38, %v893_v58  ;;  %vm892_vm3 = vcmp.eq.f32.partialorder %v891_v54, 8.507059e+37 }
 0x4f6   :  { %v914_v43 = vor.u32 1.1754944e-38, %v913_v44  ;;  %vm912_vm7 = vcmp.eq.f32.partialorder %v911_v46, 8.507059e+37 }
 0x4f9   :  { %v1170_v33 = vpop.eup %1169 }
 0x4fa   :  { %v1172_v37 = vpop.eup %1171  ;;  %v883_v40 = vmul.f32 %v1170_v33, %v881_v30  ;;  %vm888_vm0 = vweird.f32 %v1170_v33 }
 0x4fb   :  { %v903_v61 = vmul.f32 %v1172_v37, %v901_v32  ;;  %vm889_vm2 = vmor %vm887_vm1, %vm888_vm0  ;;  %vm908_vm4 = vweird.f32 %v1172_v37 }
 0x4fc   :  { %v884_v45 = vsub.f32 1.0, %v883_v40  ;;  %vm909_vm6 = vmor %vm907_vm5, %vm908_vm4 }
 0x4fd   :  { %v904_v8 = vsub.f32 1.0, %v903_v61 }
 0x4fe   :  { %v885_v51 = vmul.f32 %v1170_v33, %v884_v45 }
 0x4ff   :  { %v905_v28 = vmul.f32 %v1172_v37, %v904_v8 }
 0x500   :  { %v886_v2 = vadd.f32 %v1170_v33, %v885_v51 }
 0x501   :  { %v906_v34 = vadd.f32 %v1172_v37, %v905_v28 }
 0x502   :  { %v890_v15 = vsel %vm889_vm2, %v1170_v33, %v886_v2 }
 0x503   :  { %v895_v19 = vsel %vm892_vm3, %v894_v5, %v890_v15  ;;  %v910_v53 = vsel %vm909_vm6, %v1172_v37, %v906_v34 }
 0x504   :  { %v917_v25 = vmul.f32 %v895_v19, %v875_v12  ;;  %v915_v41 = vsel %vm912_vm7, %v914_v43, %v910_v53 }
 0x506   :  { %v918_v31 = vadd.f32 %v917_v25, %v816_v22 }
 0x508   :  { %1173 = vtanh.f32 %v918_v31 }
 0x50e   :  { %v1174_v56 = vpop.eup %1173 }
 0x50f   :  { %v920_v55 = vsub.f32 %v810_v9, %v1174_v56 }
 0x511   :  { %v921_v50 = vmul.f32 %v920_v55, %v915_v41 }
 0x513   :  { %v1987_v52 = vadd.f32 %v1174_v56, %v921_v50 }
 0x515   :  { %924 = vst [vmem:[#allocation11 + $0x30] sm:$0xff] %v1987_v52  ;;  %945 = vmatmul.f32.vlgmr.msrb.gmra.mxu1 %v1987_v52  ;;  %965 = vmatmul.f32.vlgmr.msrb.gmra.mxu2 %v1987_v52 }
 0x516   :  { %985 = vmatmul.f32.vlgmr.msrb.gmra.mxu3 %v1987_v52 }
 0x592   :  { %v946_v57 = vpop.f32.mrf.mxu1 }
 0x593   :  { %v947_v59 = vadd.f32 %v946_v57, %v2067_v10 }
 0x595   :  { %v989_v63 = vadd.f32 %v947_v59, %v926_v60 }
 0x597   :  { %v1093_v62 = vmul.f32 -1.442695, %v989_v63 }
 0x598   :  { %v966_v36 = vpop.f32.mrf.mxu2 }
 0x599   :  { %1175 = vpow2.f32 %v1093_v62  ;;  %v967_v48 = vadd.f32 %v966_v36, %v2068_v16  ;;  %v986_v14 = vpop.f32.mrf.mxu3 }
 0x59a   :  { %v987_v21 = vadd.f32 %v986_v14, %v1722_v47 }
 0x59b   :  { %v1009_v35 = vadd.f32 %v967_v48, %v927_v39 }
 0x59d   :  { %v1094_v38 = vmul.f32 -1.442695, %v1009_v35 }
 0x59f   :  { %v1176_v49 = vpop.eup %1175  ;;  %1177 = vpow2.f32 %v1094_v38 }
 0x5a0   :  { %v993_v0 = vadd.f32 1.0, %v1176_v49 }
 0x5a2   :  { %1179 = vrcp.f32 %v993_v0  ;;  %v1005_v10 = vand.u32 2147483648, %v993_v0  ;;  %v1003_v11 = vand.u32 2147483647, %v993_v0  ;;  %vm999_vm9 = vweird.f32 %v993_v0 }
 0x5a4   :  { %v1006_v18 = vor.u32 1.1754944e-38, %v1005_v10  ;;  %vm1004_vm11 = vcmp.eq.f32.partialorder %v1003_v11, 8.507059e+37 }
 0x5a5   :  { %v1178_v1 = vpop.eup %1177 }
 0x5a6   :  { %v1013_v3 = vadd.f32 1.0, %v1178_v1 }
 0x5a8   :  { %v1180_v4 = vpop.eup %1179  ;;  %1181 = vrcp.f32 %v1013_v3  ;;  %v1025_v33 = vand.u32 2147483648, %v1013_v3  ;;  %vm1019_vm13 = vweird.f32 %v1013_v3  ;;  %v1023_v37 = vand.u32 2147483647, %v1013_v3 }
 0x5a9   :  { %v995_v6 = vmul.f32 %v1180_v4, %v993_v0  ;;  %vm1000_vm8 = vweird.f32 %v1180_v4 }
 0x5aa   :  { %vm1001_vm10 = vmor %vm999_vm9, %vm1000_vm8  ;;  %v1026_v58 = vor.u32 1.1754944e-38, %v1025_v33  ;;  %vm1024_vm15 = vcmp.eq.f32.partialorder %v1023_v37, 8.507059e+37 }
 0x5ab   :  { %v996_v7 = vsub.f32 1.0, %v995_v6 }
 0x5ad   :  { %v997_v9 = vmul.f32 %v1180_v4, %v996_v7 }
 0x5ae   :  { %v1182_v13 = vpop.eup %1181 }
 0x5af   :  { %v1015_v17 = vmul.f32 %v1182_v13, %v1013_v3  ;;  %v998_v16 = vadd.f32 %v1180_v4, %v997_v9  ;;  %vm1020_vm12 = vweird.f32 %v1182_v13 }
 0x5b0   :  { %vm1021_vm14 = vmor %vm1019_vm13, %vm1020_vm12 }
 0x5b1   :  { %v1016_v20 = vsub.f32 1.0, %v1015_v17  ;;  %v1002_v23 = vsel %vm1001_vm10, %v1180_v4, %v998_v16 }
 0x5b2   :  { %v1007_v26 = vsel %vm1004_vm11, %v1006_v18, %v1002_v23 }
 0x5b3   :  { %v1029_v27 = vmul.f32 %v1007_v26, %v987_v21  ;;  %v1017_v29 = vmul.f32 %v1182_v13, %v1016_v20 }
 0x5b5   :  { %v1030_v30 = vadd.f32 %v1029_v27, %v928_v24  ;;  %v1018_v32 = vadd.f32 %v1182_v13, %v1017_v29 }
 0x5b7   :  { %1183 = vtanh.f32 %v1030_v30  ;;  %v1022_v40 = vsel %vm1021_vm14, %v1182_v13, %v1018_v32 }
 0x5b8   :  { %v1027_v61 = vsel %vm1024_vm15, %v1026_v58, %v1022_v40 }
 0x5bd   :  { %v1184_v45 = vpop.eup %1183 }
 0x5be   :  { %v1032_v47 = vsub.f32 %v1987_v52, %v1184_v45 }
 0x5c0   :  { %v1033_v51 = vmul.f32 %v1032_v47, %v1027_v61 }
 0x5c2   :  { %v1034_v54 = vadd.f32 %v1184_v45, %v1033_v51 }
 0x5c4   :  { %1036 = vst [vmem:[#allocation11 + $0x38] sm:$0xff] %v1034_v54 }
 0x5c5   :  { %1041 = vst [vmem:[#allocation12] sm:$0xff] %v1034_v54  ;;  %1054 = dma.vmem_to_hbm [thread:$0]  %s1047_s3, 1024, %s1049_s15, [#allocation5], %s1395_s21, %s1395_s21, %s1396_s22  }
 0x5c6   :  { %1065 = dma.vmem_to_hbm [thread:$0]  %s1061_s17, 128, %s1063_s20, [#allocation13]  }
 0x5c7   :  { %1383 = dma.done.wait [#allocation5], 1024  }
 0x5c8   :  { %1384 = vsyncadd [#allocation5], 4294966272 }
 0x5c9   :  { %1385 = dma.done.wait [#allocation13], 128  }
 0x5ca   :  { %1386 = vsyncadd [#allocation13], 4294967168 }
 0x5cb   :  { %1074 = vsyncpa [#allocation4], 1 }
 0x5cc   :  { %1075 = vsyncpa [#allocation7], 1 }
 0x5cd   :  { %1076 = vsyncpa [#allocation10], 1 }
 0x5ce   :  { %1077 = vsyncpa [#allocation5], 1 }
 0x5cf   :  { %1078 = vsyncpa [#allocation13], 1 }

</bundles_post_ra>
